<compile_context>
chip_gen: v6e
topology: v6e:2x2x1
jax: 0.10.0
libtpu: 0.0.40
codegen_flags: <defaults>
</compile_context>

<pallas_src>
import jax
import jax.numpy as jnp
import numpy as np
from jax.experimental import pallas as pl
from jax.experimental.pallas import tpu as pltpu

INPUT_DIMS = 2
MULTIRES = 10
HIDDEN = (32, 32)
OUT_SIZE = 1
N_FREQ_ROWS = MULTIRES * INPUT_DIMS                 # 20
EMBED_DIM = INPUT_DIMS + 2 * N_FREQ_ROWS            # 42
# 2 ** linspace(0, multires-1, multires): exact powers of two.
FREQS = [float(2.0 ** e) for e in np.linspace(0.0, MULTIRES - 1, MULTIRES)]
TM_MAX = 8192                                       # points per grid step (lane axis)


def mlp3d_kernel(x_ref, a_ref, w1x_ref, w1s_ref, w1c_ref, b1_ref,
                 w2_ref, b2_ref, w3_ref, o_ref):
    """Fused embed + 3-layer MLP on a (INPUT_DIMS, TM) tile of raw points."""
    x = x_ref[...]                                  # (2, TM) f32
    a = a_ref[...]                                  # (20, 2) f32, row k -> f_{k//2} at dim k%2
    # xf[k, :] = f_{k//2} * x[k%2, :]  -- pure VPU broadcasts, exact (powers of 2).
    xf = a[:, 0:1] * x[0:1, :]
    for d in range(1, INPUT_DIMS):
        xf = xf + a[:, d:d + 1] * x[d:d + 1, :]     # (20, TM) f32
    s = jnp.sin(xf)                                 # EUP, f32
    c = jnp.cos(xf)

    # Layer 1 (bias=True), split over the [x | sin | cos] channel groups so the
    # 42-channel embedding never has to be concatenated in VMEM.
    h = jnp.dot(w1x_ref[...], x, preferred_element_type=jnp.float32)
    h += jnp.dot(w1s_ref[...], s, preferred_element_type=jnp.float32)
    h += jnp.dot(w1c_ref[...], c, preferred_element_type=jnp.float32)
    h = jnp.maximum(h + b1_ref[...], 0.0)           # ReLU (use_gelu=False)

    # Layer 2 (bias=True).
    h = jnp.dot(w2_ref[...], h, preferred_element_type=jnp.float32)
    h = jnp.maximum(h + b2_ref[...], 0.0)           # ReLU

    # Output layer (bias=False); lane-dense (OUT_SIZE, TM) store.
    o_ref[...] = jnp.dot(w3_ref[...], h, preferred_element_type=jnp.float32)


def _round_up(x, m):
    return (x + m - 1) // m * m


def _freq_matrix():
    """(20, 2) matrix: row k has freq f_{k//INPUT_DIMS} at column k % INPUT_DIMS."""
    a = np.zeros((N_FREQ_ROWS, INPUT_DIMS), np.float32)
    for i, f in enumerate(FREQS):
        for d in range(INPUT_DIMS):
            a[i * INPUT_DIMS + d, d] = f
    return jnp.asarray(a)


@jax.jit
def mlp3d_forward(model_input, params):
    w1, b1, w2, b2, w3 = params                     # natural (in, out) layout, f32
    n = model_input.shape[0]
    tm = min(TM_MAX, _round_up(max(n, 1), 128))
    n_pad = _round_up(n, tm)
    grid = (n_pad // tm,)

    # Points-on-lanes layout: (INPUT_DIMS, n_pad); pad the point axis to tm.
    x_t = jnp.pad(model_input.astype(jnp.float32), ((0, n_pad - n), (0, 0))).T

    # Channels-first weights; split layer-1 columns into [x | sin | cos] groups
    # matching the embedding order [x, sin(f_i*x), cos(f_i*x), ...].
    w1_t = w1.T.astype(jnp.float32)                 # (H0, 42)
    sin_cols = jnp.asarray(
        [INPUT_DIMS + 2 * INPUT_DIMS * i + d
         for i in range(MULTIRES) for d in range(INPUT_DIMS)], jnp.int32)
    cos_cols = sin_cols + INPUT_DIMS
    w1x = w1_t[:, :INPUT_DIMS]                                  # (H0, 2)
    w1s = jnp.take(w1_t, sin_cols, axis=1)                      # (H0, 20)
    w1c = jnp.take(w1_t, cos_cols, axis=1)                      # (H0, 20)
    b1c = b1.reshape(HIDDEN[0], 1).astype(jnp.float32)
    w2t = w2.T.astype(jnp.float32)                              # (H1, H0)
    b2c = b2.reshape(HIDDEN[1], 1).astype(jnp.float32)
    w3t = w3.T.astype(jnp.float32)                              # (OUT, H1)
    a_mat = _freq_matrix()

    weight_bytes = 4 * (EMBED_DIM * HIDDEN[0] + HIDDEN[0]
                        + HIDDEN[0] * HIDDEN[1] + HIDDEN[1]
                        + HIDDEN[1] * OUT_SIZE)
    cost = pl.CostEstimate(
        flops=2 * n_pad * (N_FREQ_ROWS * INPUT_DIMS
                           + EMBED_DIM * HIDDEN[0]
                           + HIDDEN[0] * HIDDEN[1]
                           + HIDDEN[1] * OUT_SIZE),
        transcendentals=2 * N_FREQ_ROWS * n_pad,
        bytes_accessed=n_pad * 4 * (INPUT_DIMS + OUT_SIZE) + weight_bytes)

    full = lambda i: (0, 0)
    out_t = pl.pallas_call(
        mlp3d_kernel,
        out_shape=jax.ShapeDtypeStruct((OUT_SIZE, n_pad), jnp.float32),
        grid=grid,
        in_specs=[
            pl.BlockSpec((INPUT_DIMS, tm), lambda i: (0, i)),    # raw points tile
            pl.BlockSpec((N_FREQ_ROWS, INPUT_DIMS), full),       # freq matrix
            pl.BlockSpec((HIDDEN[0], INPUT_DIMS), full),         # W1 (x cols)
            pl.BlockSpec((HIDDEN[0], N_FREQ_ROWS), full),        # W1 (sin cols)
            pl.BlockSpec((HIDDEN[0], N_FREQ_ROWS), full),        # W1 (cos cols)
            pl.BlockSpec((HIDDEN[0], 1), full),                  # b1
            pl.BlockSpec((HIDDEN[1], HIDDEN[0]), full),          # W2
            pl.BlockSpec((HIDDEN[1], 1), full),                  # b2
            pl.BlockSpec((OUT_SIZE, HIDDEN[1]), full),           # W3
        ],
        out_specs=pl.BlockSpec((OUT_SIZE, tm), lambda i: (0, i)),
        compiler_params=pltpu.CompilerParams(
            dimension_semantics=("parallel",)),
        cost_estimate=cost,
    )(x_t, a_mat, w1x, w1s, w1c, b1c, w2t, b2c, w3t)

    # output_type='logits' -> identity; Bernoulli(logits=x).logits -> identity.
    # TODO(synk): output_type='sdf' would add jnp.tanh(out) here.
    return out_t.T[:n]                              # (n, OUT_SIZE)


def positional_embed(x):
    """Embedder.embed: [x, sin(f0*x), cos(f0*x), sin(f1*x), cos(f1*x), ...]."""
    parts = [x]
    for f in FREQS:
        parts.append(jnp.sin(x * f))
        parts.append(jnp.cos(x * f))
    return jnp.concatenate(parts, axis=-1)          # (N, 42)


def reference_forward(model_input, params):
    """Pure-JAX (f32) reference of the PyTorch forward."""
    w1, b1, w2, b2, w3 = params
    h = positional_embed(model_input.astype(jnp.float32))
    h = jnp.maximum(jnp.dot(h, w1, preferred_element_type=jnp.float32) + b1, 0.0)
    h = jnp.maximum(jnp.dot(h, w2, preferred_element_type=jnp.float32) + b2, 0.0)
    return jnp.dot(h, w3, preferred_element_type=jnp.float32)


def init_params(key):
    """PyTorch nn.Linear default init: U(-1/sqrt(fan_in), 1/sqrt(fan_in))."""
    ks = jax.random.split(key, 5)

    def u(k, shape, fan_in):
        bound = 1.0 / float(np.sqrt(fan_in))
        return jax.random.uniform(k, shape, jnp.float32, -bound, bound)

    w1 = u(ks[0], (EMBED_DIM, HIDDEN[0]), EMBED_DIM)
    b1 = u(ks[1], (HIDDEN[0],), EMBED_DIM)
    w2 = u(ks[2], (HIDDEN[0], HIDDEN[1]), HIDDEN[0])
    b2 = u(ks[3], (HIDDEN[1],), HIDDEN[0])
    w3 = u(ks[4], (HIDDEN[1], OUT_SIZE), HIDDEN[1])  # final layer: bias=False
    return (w1, b1, w2, b2, w3)


if __name__ == "__main__":
    key = jax.random.PRNGKey(0)
    k_x, k_p = jax.random.split(key)

    n_points = 300   # deliberately NOT a multiple of 128 to exercise padding
    model_input = jax.random.uniform(
        k_x, (n_points, INPUT_DIMS), jnp.float32, minval=-1.0, maxval=1.0)
    params = init_params(k_p)

    out = jax.block_until_ready(mlp3d_forward(model_input, params))
    assert out.shape == (n_points, OUT_SIZE)

    ref = reference_forward(model_input, params)
    assert jnp.allclose(out, ref, atol=2e-3, rtol=1e-3), "mismatch vs f32 reference"

    print("KERNEL_OK")
</pallas_src>

<mosaic_0001>
module attributes {stable_mosaic.version = 11 : i64} {
  func.func @mlp3d_kernel(%arg0: i32, %arg1: memref<2x384xf32, #tpu.memory_space<vmem>>, %arg2: memref<20x2xf32, #tpu.memory_space<vmem>>, %arg3: memref<32x2xf32, #tpu.memory_space<vmem>>, %arg4: memref<32x20xf32, #tpu.memory_space<vmem>>, %arg5: memref<32x20xf32, #tpu.memory_space<vmem>>, %arg6: memref<32x1xf32, #tpu.memory_space<vmem>>, %arg7: memref<32x32xf32, #tpu.memory_space<vmem>>, %arg8: memref<32x1xf32, #tpu.memory_space<vmem>>, %arg9: memref<1x32xf32, #tpu.memory_space<vmem>>, %arg10: memref<1x384xf32, #tpu.memory_space<vmem>>) attributes {dimension_semantics = [#tpu.dimension_semantics<parallel>], iteration_bounds = array<i64: 1>, scalar_prefetch = 0 : i64, scratch_operands = 0 : i64, tpu.core_type = #tpu.core_type<tc>, window_params = [{transform_indices = @transform_0, window_bounds = array<i64: 2, 384>}, {pipeline_mode = #tpu.pipeline_mode<synchronous>, transform_indices = @transform_1, window_bounds = array<i64: 20, 2>}, {pipeline_mode = #tpu.pipeline_mode<synchronous>, transform_indices = @transform_2, window_bounds = array<i64: 32, 2>}, {pipeline_mode = #tpu.pipeline_mode<synchronous>, transform_indices = @transform_3, window_bounds = array<i64: 32, 20>}, {pipeline_mode = #tpu.pipeline_mode<synchronous>, transform_indices = @transform_4, window_bounds = array<i64: 32, 20>}, {pipeline_mode = #tpu.pipeline_mode<synchronous>, transform_indices = @transform_5, window_bounds = array<i64: 32, 1>}, {pipeline_mode = #tpu.pipeline_mode<synchronous>, transform_indices = @transform_6, window_bounds = array<i64: 32, 32>}, {pipeline_mode = #tpu.pipeline_mode<synchronous>, transform_indices = @transform_7, window_bounds = array<i64: 32, 1>}, {pipeline_mode = #tpu.pipeline_mode<synchronous>, transform_indices = @transform_8, window_bounds = array<i64: 1, 32>}, {transform_indices = @transform_9, window_bounds = array<i64: 1, 384>}]} {
    %c0 = arith.constant 0 : index
    %c0_0 = arith.constant 0 : index
    %0 = vector.load %arg1[%c0, %c0_0] : memref<2x384xf32, #tpu.memory_space<vmem>>, vector<2x384xf32>
    %c0_1 = arith.constant 0 : index
    %c0_2 = arith.constant 0 : index
    %1 = vector.load %arg2[%c0_1, %c0_2] : memref<20x2xf32, #tpu.memory_space<vmem>>, vector<20x2xf32>
    %2 = vector.extract_strided_slice %1 {offsets = [0, 0], sizes = [20, 1], strides = [1, 1]} : vector<20x2xf32> to vector<20x1xf32>
    %3 = vector.extract_strided_slice %0 {offsets = [0, 0], sizes = [1, 384], strides = [1, 1]} : vector<2x384xf32> to vector<1x384xf32>
    %4 = vector.broadcast %2 : vector<20x1xf32> to vector<20x384xf32>
    %5 = vector.broadcast %3 : vector<1x384xf32> to vector<20x384xf32>
    %6 = arith.mulf %4, %5 : vector<20x384xf32>
    %7 = vector.extract_strided_slice %1 {offsets = [0, 1], sizes = [20, 1], strides = [1, 1]} : vector<20x2xf32> to vector<20x1xf32>
    %8 = vector.extract_strided_slice %0 {offsets = [1, 0], sizes = [1, 384], strides = [1, 1]} : vector<2x384xf32> to vector<1x384xf32>
    %9 = vector.broadcast %7 : vector<20x1xf32> to vector<20x384xf32>
    %10 = vector.broadcast %8 : vector<1x384xf32> to vector<20x384xf32>
    %11 = arith.mulf %9, %10 : vector<20x384xf32>
    %12 = arith.addf %6, %11 : vector<20x384xf32>
    %13 = math.sin %12 : vector<20x384xf32>
    %14 = math.cos %12 : vector<20x384xf32>
    %c0_3 = arith.constant 0 : index
    %c0_4 = arith.constant 0 : index
    %15 = vector.load %arg3[%c0_3, %c0_4] : memref<32x2xf32, #tpu.memory_space<vmem>>, vector<32x2xf32>
    %cst = arith.constant dense<0.000000e+00> : vector<32x384xf32>
    %16 = tpu.matmul %15, %0, %cst {dimension_numbers = #tpu.dot_dimension_numbers<[1], [0], [0], [1], [0, 0, 1, 1], [], []>} : vector<32x2xf32>, vector<2x384xf32>, vector<32x384xf32> -> vector<32x384xf32>
    %c0_5 = arith.constant 0 : index
    %c0_6 = arith.constant 0 : index
    %17 = vector.load %arg4[%c0_5, %c0_6] : memref<32x20xf32, #tpu.memory_space<vmem>>, vector<32x20xf32>
    %cst_7 = arith.constant dense<0.000000e+00> : vector<32x384xf32>
    %18 = tpu.matmul %17, %13, %cst_7 {dimension_numbers = #tpu.dot_dimension_numbers<[1], [0], [0], [1], [0, 0, 1, 1], [], []>} : vector<32x20xf32>, vector<20x384xf32>, vector<32x384xf32> -> vector<32x384xf32>
    %19 = arith.addf %16, %18 : vector<32x384xf32>
    %c0_8 = arith.constant 0 : index
    %c0_9 = arith.constant 0 : index
    %20 = vector.load %arg5[%c0_8, %c0_9] : memref<32x20xf32, #tpu.memory_space<vmem>>, vector<32x20xf32>
    %cst_10 = arith.constant dense<0.000000e+00> : vector<32x384xf32>
    %21 = tpu.matmul %20, %14, %cst_10 {dimension_numbers = #tpu.dot_dimension_numbers<[1], [0], [0], [1], [0, 0, 1, 1], [], []>} : vector<32x20xf32>, vector<20x384xf32>, vector<32x384xf32> -> vector<32x384xf32>
    %22 = arith.addf %19, %21 : vector<32x384xf32>
    %c0_11 = arith.constant 0 : index
    %c0_12 = arith.constant 0 : index
    %23 = vector.load %arg6[%c0_11, %c0_12] : memref<32x1xf32, #tpu.memory_space<vmem>>, vector<32x1xf32>
    %24 = vector.broadcast %23 : vector<32x1xf32> to vector<32x384xf32>
    %25 = arith.addf %22, %24 : vector<32x384xf32>
    %cst_13 = arith.constant 0.000000e+00 : f32
    %26 = vector.broadcast %cst_13 : f32 to vector<32x384xf32>
    %27 = arith.maximumf %25, %26 : vector<32x384xf32>
    %c0_14 = arith.constant 0 : index
    %c0_15 = arith.constant 0 : index
    %28 = vector.load %arg7[%c0_14, %c0_15] : memref<32x32xf32, #tpu.memory_space<vmem>>, vector<32x32xf32>
    %cst_16 = arith.constant dense<0.000000e+00> : vector<32x384xf32>
    %29 = tpu.matmul %28, %27, %cst_16 {dimension_numbers = #tpu.dot_dimension_numbers<[1], [0], [0], [1], [0, 0, 1, 1], [], []>} : vector<32x32xf32>, vector<32x384xf32>, vector<32x384xf32> -> vector<32x384xf32>
    %c0_17 = arith.constant 0 : index
    %c0_18 = arith.constant 0 : index
    %30 = vector.load %arg8[%c0_17, %c0_18] : memref<32x1xf32, #tpu.memory_space<vmem>>, vector<32x1xf32>
    %31 = vector.broadcast %30 : vector<32x1xf32> to vector<32x384xf32>
    %32 = arith.addf %29, %31 : vector<32x384xf32>
    %cst_19 = arith.constant 0.000000e+00 : f32
    %33 = vector.broadcast %cst_19 : f32 to vector<32x384xf32>
    %34 = arith.maximumf %32, %33 : vector<32x384xf32>
    %c0_20 = arith.constant 0 : index
    %c0_21 = arith.constant 0 : index
    %35 = vector.load %arg9[%c0_20, %c0_21] : memref<1x32xf32, #tpu.memory_space<vmem>>, vector<1x32xf32>
    %cst_22 = arith.constant dense<0.000000e+00> : vector<1x384xf32>
    %36 = tpu.matmul %35, %34, %cst_22 {dimension_numbers = #tpu.dot_dimension_numbers<[1], [0], [0], [1], [0, 0, 1, 1], [], []>} : vector<1x32xf32>, vector<32x384xf32>, vector<1x384xf32> -> vector<1x384xf32>
    %c0_23 = arith.constant 0 : index
    %c0_24 = arith.constant 0 : index
    %37 = vector.load %arg10[%c0_23, %c0_24] : memref<1x384xf32, #tpu.memory_space<vmem>>, vector<1x384xf32>
    tpu.vector_store %arg10[%c0_23, %c0_24], %36 {strides = array<i32>} : memref<1x384xf32, #tpu.memory_space<vmem>>, vector<1x384xf32>,
    return
  }
  func.func @transform_0(%arg0: i32) -> (i32, i32) {
    %c0_i32 = arith.constant 0 : i32
    %c0_i32_0 = arith.constant 0 : i32
    return %c0_i32, %arg0 : i32, i32
  }
  func.func @transform_1(%arg0: i32) -> (i32, i32) {
    %c0_i32 = arith.constant 0 : i32
    %c0_i32_0 = arith.constant 0 : i32
    %c0_i32_1 = arith.constant 0 : i32
    return %c0_i32, %c0_i32_0 : i32, i32
  }
  func.func @transform_2(%arg0: i32) -> (i32, i32) {
    %c0_i32 = arith.constant 0 : i32
    %c0_i32_0 = arith.constant 0 : i32
    %c0_i32_1 = arith.constant 0 : i32
    return %c0_i32, %c0_i32_0 : i32, i32
  }
  func.func @transform_3(%arg0: i32) -> (i32, i32) {
    %c0_i32 = arith.constant 0 : i32
    %c0_i32_0 = arith.constant 0 : i32
    %c0_i32_1 = arith.constant 0 : i32
    return %c0_i32, %c0_i32_0 : i32, i32
  }
  func.func @transform_4(%arg0: i32) -> (i32, i32) {
    %c0_i32 = arith.constant 0 : i32
    %c0_i32_0 = arith.constant 0 : i32
    %c0_i32_1 = arith.constant 0 : i32
    return %c0_i32, %c0_i32_0 : i32, i32
  }
  func.func @transform_5(%arg0: i32) -> (i32, i32) {
    %c0_i32 = arith.constant 0 : i32
    %c0_i32_0 = arith.constant 0 : i32
    %c0_i32_1 = arith.constant 0 : i32
    return %c0_i32, %c0_i32_0 : i32, i32
  }
  func.func @transform_6(%arg0: i32) -> (i32, i32) {
    %c0_i32 = arith.constant 0 : i32
    %c0_i32_0 = arith.constant 0 : i32
    %c0_i32_1 = arith.constant 0 : i32
    return %c0_i32, %c0_i32_0 : i32, i32
  }
  func.func @transform_7(%arg0: i32) -> (i32, i32) {
    %c0_i32 = arith.constant 0 : i32
    %c0_i32_0 = arith.constant 0 : i32
    %c0_i32_1 = arith.constant 0 : i32
    return %c0_i32, %c0_i32_0 : i32, i32
  }
  func.func @transform_8(%arg0: i32) -> (i32, i32) {
    %c0_i32 = arith.constant 0 : i32
    %c0_i32_0 = arith.constant 0 : i32
    %c0_i32_1 = arith.constant 0 : i32
    return %c0_i32, %c0_i32_0 : i32, i32
  }
  func.func @transform_9(%arg0: i32) -> (i32, i32) {
    %c0_i32 = arith.constant 0 : i32
    %c0_i32_0 = arith.constant 0 : i32
    return %c0_i32, %arg0 : i32, i32
  }
}

</mosaic_0001>

<bundles_post_ra>
// kernel: mlp3d_forward.1
= control target key start
LH: loop header
LB: loop body
LE: loop exit
PB: predicated region body
PF: predicated region fallthrough
CT: control target
= control target key end

     0   :  { %v3386_v0 = vmov 0   ;;  %v3387_v3 = vmov 1   ;;  %v4798_v10 = vlaneseq  ;;  %s4788_s1 = inlined_call_operand.vmem [shape: f32[20,2], index: 1, kind: input, shape index: {}]   ;;  %s4789_s5 = inlined_call_operand.vmem [shape: f32[32,1], index: 5, kind: input, shape index: {}]   ;;  %s4790_s7 = inlined_call_operand.vmem [shape: f32[32,1], index: 7, kind: input, shape index: {}]   ;;  %s4791_s0 = inlined_call_operand.vmem [shape: f32[2,384], index: 0, kind: input, shape index: {}]   ;;  %s4792_s3 = inlined_call_operand.vmem [shape: f32[32,20], index: 3, kind: input, shape index: {}]   ;;  %s4793_s2 = inlined_call_operand.vmem [shape: f32[32,2], index: 2, kind: input, shape index: {}]   ;;  %s4794_s4 = inlined_call_operand.vmem [shape: f32[32,20], index: 4, kind: input, shape index: {}]   ;;  %s4795_s6 = inlined_call_operand.vmem [shape: f32[32,32], index: 6, kind: input, shape index: {}]   ;;  %s4796_s8 = inlined_call_operand.vmem [shape: f32[1,32], index: 8, kind: input, shape index: {}]   ;;  %s4797_s9 = inlined_call_operand.vmem [shape: f32[1,384], index: 9, kind: output, shape index: {}]  }
   0x1   :  { %3344 = vset.pattern.permute.xlu1 %v3386_v0  ;;  %3342 = vset.pattern.permute.xlu0 %v3386_v0  ;;  %v35_v1 = vld [vmem:[%s4788_s1 + $0x10] sm:$0xf]  ;;  %v34_v2 = vld [vmem:[%s4788_s1 + $0x8] sm:$0xff]  ;;  %v33_v4 = vld [vmem:[%s4788_s1] sm:$0xff] }
   0x2   :  { %48 = vperm.xlu0 %3342, %v35_v1   ;;  %43 = vperm.xlu1 %3344, %v34_v2   ;;  %v2637_v5 = vld [vmem:[%s4789_s5 + $0x18] sm:$0xff]  ;;  %v2635_v6 = vld [vmem:[%s4789_s5 + $0x8] sm:$0xff]  ;;  %v2634_v7 = vld [vmem:[%s4789_s5] sm:$0xff]  ;;  %v3473_v11 = vshrl.u32 %v4798_v10, 7 }
   0x3   :  { %v2688_v8 = vld [vmem:[%s4790_s7 + $0x10] sm:$0xff]  ;;  %v2686_v9 = vld [vmem:[%s4790_s7] sm:$0xff] }
   0x4   :  { %v54_v12 = vsub.s32 0, %v3473_v11  ;;  %v58_v13 = vsub.s32 2, %v3473_v11  ;;  %v62_v14 = vsub.s32 4, %v3473_v11  ;;  %v32_v15 = vld [vmem:[%s4791_s0] sm:$0x3f]  ;;  %v102_v16 = vsub.s32 1, %v3473_v11 }
   0x5   :  { %v106_v17 = vsub.s32 3, %v3473_v11  ;;  %v110_v18 = vsub.s32 5, %v3473_v11 }
   0x6   :  { %3343 = vset.pattern.permute.xlu0 %v3387_v3  ;;  %3345 = vset.pattern.permute.xlu1 %v3387_v3  ;;  %v55_v19 = vrot.slane %v32_v15, %v54_v12  ;;  %v59_v20 = vrot.slane %v32_v15, %v58_v13  ;;  %v63_v21 = vrot.slane %v32_v15, %v62_v14 }
   0x7   :  { %97 = vperm.xlu0 %3343, %v35_v1   ;;  %93 = vperm.xlu1 %3345, %v34_v2   ;;  %v103_v22 = vrot.slane %v32_v15, %v102_v16  ;;  %v107_v23 = vrot.slane %v32_v15, %v106_v17  ;;  %v111_v24 = vrot.slane %v32_v15, %v110_v18 }
   0x8   :  { %v70_v27 = vrot.slane %v55_v19, %v54_v12  ;;  %v74_v28 = vrot.slane %v59_v20, %v54_v12  ;;  %v78_v29 = vrot.slane %v63_v21, %v54_v12 }
   0x9   :  { %v118_v30 = vrot.slane %v103_v22, %v102_v16  ;;  %v122_v31 = vrot.slane %v107_v23, %v102_v16  ;;  %v126_v32 = vrot.slane %v111_v24, %v102_v16 }
   0xb   :  { %3346 = vset.pattern.permute.xlu1 %v3386_v0  ;;  %89 = vperm.xlu0 %3343, %v33_v4  }
   0xc   :  { %38 = vperm.xlu1 %3346, %v33_v4  }
   0xf   :  { %3347 = vset.pattern.permute.xlu0 %v3386_v0 }
  0x10   :  { %2655 = vperm.xlu1 %3346, %v2637_v5  }
  0x14   :  { %2645 = vperm.xlu1 %3346, %v2635_v6  }
  0x18   :  { %2640 = vperm.xlu1 %3346, %v2634_v7  }
  0x1c   :  { %2702 = vperm.xlu1 %3346, %v2688_v8  }
  0x20   :  { %2692 = vperm.xlu1 %3346, %v2686_v9  }
  0x7d   :  { %v44_v25 = vpop.permute.xlu1 %43  ;;  %v49_v26 = vpop.permute.xlu0 %48 }
  0x7e   :  { %v82_v33 = vmul.f32 %v70_v27, %v44_v25  ;;  %v86_v34 = vmul.f32 %v74_v28, %v49_v26  ;;  %v87_v37 = vmul.f32 %v78_v29, %v49_v26  ;;  %v83_v41 = vmul.f32 %v74_v28, %v44_v25 }
  0x7f   :  { %v84_v42 = vmul.f32 %v78_v29, %v44_v25  ;;  %v85_v54 = vmul.f32 %v70_v27, %v49_v26 }
  0x82   :  { %v98_v35 = vpop.permute.xlu0 %97  ;;  %v94_v36 = vpop.permute.xlu1 %93 }
  0x83   :  { %v134_v38 = vmul.f32 %v122_v31, %v98_v35  ;;  %v135_v39 = vmul.f32 %v126_v32, %v98_v35  ;;  %v130_v40 = vmul.f32 %v118_v30, %v94_v36  ;;  %v131_v43 = vmul.f32 %v122_v31, %v94_v36 }
  0x84   :  { %v132_v44 = vmul.f32 %v126_v32, %v94_v36  ;;  %v133_v50 = vmul.f32 %v118_v30, %v98_v35 }
  0x85   :  { %v3484_v45 = vadd.f32 %v134_v38, %v86_v34  ;;  %v3486_v46 = vadd.f32 %v135_v39, %v87_v37  ;;  %v3488_v47 = vadd.f32 %v130_v40, %v82_v33  ;;  %v3490_v48 = vadd.f32 %v131_v43, %v83_v41 }
  0x86   :  { %v3492_v49 = vadd.f32 %v132_v44, %v84_v42  ;;  %v90_v52 = vpop.permute.xlu0 %89  ;;  %v3496_v60 = vadd.f32 %v133_v50, %v85_v54  ;;  %v3390_v33 = vmov 2131351028   ;;  %v3391_v38 = vmov 920167782  }
  0x87   :  { %v876_v51 = vand.u32 2139095040, %v3484_v45  ;;  %v39_v53 = vpop.permute.xlu1 %38  ;;  %v980_v56 = vand.u32 2139095040, %v3486_v46  ;;  %v127_v57 = vmul.f32 %v118_v30, %v90_v52  ;;  %v128_v58 = vmul.f32 %v122_v31, %v90_v52 }
  0x88   :  { %v79_v59 = vmul.f32 %v70_v27, %v39_v53  ;;  %v80_v62 = vmul.f32 %v74_v28, %v39_v53  ;;  %v772_v3 = vand.u32 2139095040, %v3496_v60  ;;  %v460_v5 = vand.u32 2139095040, %v3488_v47 }
  0x89   :  { %v877_v55 = vshrl.u32 %v876_v51, 23  ;;  %v981_v0 = vshrl.u32 %v980_v56, 23  ;;  %v129_v7 = vmul.f32 %v126_v32, %v90_v52  ;;  %v81_v8 = vmul.f32 %v78_v29, %v39_v53 }
  0x8a   :  { %v3498_v1 = vadd.f32 %v127_v57, %v79_v59  ;;  %v3500_v2 = vadd.f32 %v128_v58, %v80_v62  ;;  %v773_v9 = vshrl.u32 %v772_v3, 23  ;;  %v564_v13 = vand.u32 2139095040, %v3490_v48 }
  0x8b   :  { %v3118_v61 = vadd.s32 4294967169, %v877_v55  ;;  %v3122_v6 = vadd.s32 4294967169, %v981_v0  ;;  %v668_v14 = vand.u32 2139095040, %v3492_v49  ;;  %v461_v15 = vshrl.u32 %v460_v5, 23 }
  0x8c   :  { %v3506_v17 = vadd.f32 %v129_v7, %v81_v8  ;;  %v3114_v18 = vadd.s32 4294967169, %v773_v9  ;;  %v565_v20 = vshrl.u32 %v564_v13, 23  ;;  %v873_v23 = vand.u32 2147483647, %v3484_v45 }
  0x8d   :  { %v883_v63 = vadd.s32 1, %v3118_v61  ;;  %v987_v16 = vadd.s32 1, %v3122_v6  ;;  %v669_v21 = vshrl.u32 %v668_v14, 23  ;;  %v3102_v22 = vadd.s32 4294967169, %v461_v15 }
  0x8e   :  { %v779_v24 = vadd.s32 1, %v3114_v18  ;;  %v3106_v25 = vadd.s32 4294967169, %v565_v20  ;;  %v3388_v27 = vmov 2102212464   ;;  %v3389_v31 = vmov 2475754826  }
  0x8f   :  { %vm884_vm0 = vcmp.gt.s32.totalorder %v883_v63, 0  ;;  %vm988_vm1 = vcmp.gt.s32.totalorder %v987_v16, 0  ;;  %v3110_v26 = vadd.s32 4294967169, %v669_v21  ;;  %v467_v30 = vadd.s32 1, %v3102_v22 }
  0x90   :  { %v885_v4 = vsel %vm884_vm0, %v883_v63, 0  ;;  %v989_v29 = vsel %vm988_vm1, %v987_v16, 0  ;;  %v880_v36 = vand.u32 8388607, %v873_v23  ;;  %v3392_v40 = vmov 683565275  }
  0x91   :  { %v887_v12 = vand.u32 31, %v885_v4  ;;  %v886_v35 = vshrl.u32 %v885_v4, 5  ;;  %v3393_v44 = vmov 1326507024   ;;  %vm780_vm2 = vcmp.gt.s32.totalorder %v779_v24, 0 }
  0x92   :  { %v991_v51 = vand.u32 31, %v989_v29  ;;  %v571_v57 = vadd.s32 1, %v3106_v25  ;;  %v3521_v58 = vadd.s32 1, %v3110_v26  ;;  %v3523_v61 = vsel %vm780_vm2, %v779_v24, 0 }
  0x93   :  { %v888_v19 = vsub.s32 32, %v887_v12  ;;  %v896_v37 = vshll.u32 %v3390_v33, %v887_v12  ;;  %v890_v41 = vshll.u32 %v3392_v40, %v887_v12  ;;  %v893_v42 = vshll.u32 %v3389_v31, %v887_v12 }
  0x94   :  { %v899_v43 = vshll.u32 %v3388_v27, %v887_v12  ;;  %v902_v53 = vshll.u32 %v3391_v38, %v887_v12  ;;  %vm468_vm3 = vcmp.gt.s32.totalorder %v467_v30, 0  ;;  %v881_v62 = vor.u32 8388608, %v880_v36 }
  0x95   :  { %v897_v28 = vshrl.u32 %v3388_v27, %v888_v19  ;;  %v891_v32 = vshrl.u32 %v3389_v31, %v888_v19  ;;  %v894_v34 = vshrl.u32 %v3390_v33, %v888_v19  ;;  %v900_v39 = vshrl.u32 %v3391_v38, %v888_v19 }
  0x96   :  { %v903_v50 = vshrl.u32 %v3393_v44, %v888_v19  ;;  %vm908_vm4 = vcmp.lt.s32.totalorder %v886_v35, 4  ;;  %v3525_v63 = vsub.s32 32, %v991_v51  ;;  %v889_v0 = vshrl.u32 %v3392_v40, %v888_v19 }
  0x97   :  { %v898_v52 = vor.u32 %v897_v28, %v896_v37  ;;  %v892_v54 = vor.u32 %v891_v32, %v890_v41  ;;  %v895_v55 = vor.u32 %v894_v34, %v893_v42  ;;  %v901_v56 = vor.u32 %v900_v39, %v899_v43 }
  0x98   :  { %v904_v59 = vor.u32 %v903_v50, %v902_v53  ;;  %vm905_vm5 = vcmp.lt.s32.totalorder %v886_v35, 1  ;;  %vm907_vm6 = vcmp.lt.s32.totalorder %v886_v35, 3  ;;  %vm906_vm7 = vcmp.lt.s32.totalorder %v886_v35, 2 }
  0x99   :  { %v910_v3 = vsel %vm908_vm4, %v898_v52, 2102212464  ;;  %v913_v4 = vsel %vm905_vm5, %v892_v54, %v895_v55  ;;  %v914_v5 = vsel %vm908_vm4, %v901_v56, 920167782  ;;  %v917_v6 = vsel %vm905_vm5, %v895_v55, %v898_v52 }
  0x9a   :  { %v909_v7 = vsel %vm905_vm5, %v889_v0, %v892_v54  ;;  %v915_v8 = vsel %vm907_vm6, %v898_v52, %v914_v5  ;;  %v918_v9 = vsel %vm908_vm4, %v904_v59, 1326507024  ;;  %v911_v12 = vsel %vm907_vm6, %v895_v55, %v910_v3 }
  0x9b   :  { %v916_v13 = vsel %vm906_vm7, %v913_v4, %v915_v8  ;;  %v919_v14 = vsel %vm907_vm6, %v901_v56, %v918_v9  ;;  %v921_v15 = vshll.u32 %v881_v62, 8  ;;  %v3530_v16 = vand.u32 31, %v3523_v61 }
  0x9c   :  { %v3533_v18 = vsel %vm468_vm3, %v467_v30, 0  ;;  %v920_v19 = vsel %vm906_vm7, %v917_v6, %v919_v14  ;;  %v977_v20 = vand.u32 2147483647, %v3486_v46  ;;  %v3544_v26 = vshrl.u32 %v989_v29, 5 }
  0x9d   :  { %v3537_v21 = vmul.u32.u64.low %v921_v15, %v920_v19  ;;  %v3538_v22 = vmul.u32.u64.high %v921_v15, %v920_v19, %v3537_v21  ;;  %v3540_v24 = vmul.u32.u64.low %v921_v15, %v916_v13  ;;  %v3541_v25 = vmul.u32.u64.high %v921_v15, %v916_v13, %v3540_v24 }
  0x9e   :  { %vm572_vm8 = vcmp.gt.s32.totalorder %v571_v57, 0  ;;  %v912_v28 = vsel %vm906_vm7, %v909_v7, %v911_v12  ;;  %v984_v30 = vand.u32 8388607, %v977_v20  ;;  %v994_v32 = vshll.u32 %v3392_v40, %v991_v51 }
  0x9f   :  { %v995_v34 = vshrl.u32 %v3389_v31, %v3525_v63  ;;  %v997_v36 = vshll.u32 %v3389_v31, %v991_v51  ;;  %v998_v37 = vshrl.u32 %v3390_v33, %v3525_v63  ;;  %v1000_v39 = vshll.u32 %v3390_v33, %v991_v51 }
  0xa0   :  { %v1001_v29 = vshrl.u32 %v3388_v27, %v3525_v63  ;;  %v1003_v35 = vshll.u32 %v3388_v27, %v991_v51  ;;  %v1004_v41 = vshrl.u32 %v3391_v38, %v3525_v63  ;;  %vm676_vm9 = vcmp.gt.s32.totalorder %v3521_v58, 0 }
  0xa1   :  { %vm930_vm10 = vc.u32 %v3538_v22, %v3540_v24  ;;  %v931_v42 = vadd.s32 1, %v3541_v25  ;;  %v996_v43 = vor.u32 %v995_v34, %v994_v32  ;;  %v928_v50 = vmul.u32 %v921_v15, %v912_v28 }
  0xa2   :  { %v999_v52 = vor.u32 %v998_v37, %v997_v36  ;;  %v1002_v53 = vor.u32 %v1001_v29, %v1000_v39  ;;  %v1005_v54 = vor.u32 %v1004_v41, %v1003_v35  ;;  %v985_v56 = vor.u32 8388608, %v984_v30 }
  0xa3   :  { %v932_v55 = vsel %vm930_vm10, %v931_v42, %v3541_v25  ;;  %v1006_v59 = vshll.u32 %v3391_v38, %v991_v51  ;;  %v1007_v62 = vshrl.u32 %v3393_v44, %v3525_v63  ;;  %v573_v0 = vsel %vm572_vm8, %v571_v57, 0 }
  0xa4   :  { %v933_v3 = vadd.s32 %v932_v55, %v928_v50  ;;  %vm1009_vm11 = vcmp.lt.s32.totalorder %v3544_v26, 1  ;;  %vm1012_vm12 = vcmp.lt.s32.totalorder %v3544_v26, 4  ;;  %vm1011_vm13 = vcmp.lt.s32.totalorder %v3544_v26, 3 }
  0xa5   :  { %v1008_v4 = vor.u32 %v1007_v62, %v1006_v59  ;;  %v1017_v5 = vsel %vm1009_vm11, %v996_v43, %v999_v52  ;;  %v1018_v6 = vsel %vm1012_vm12, %v1005_v54, 920167782  ;;  %vm1010_vm14 = vcmp.lt.s32.totalorder %v3544_v26, 2 }
  0xa6   :  { %v934_v7 = vadd.s32 536870912, %v933_v3  ;;  %v1019_v51 = vsel %vm1011_vm13, %v1002_v53, %v1018_v6  ;;  %v1021_v57 = vsel %vm1009_vm11, %v999_v52, %v1002_v53  ;;  %v677_v8 = vsel %vm676_vm9, %v3521_v58, 0 }
  0xa7   :  { %v1020_v9 = vsel %vm1010_vm14, %v1017_v5, %v1019_v51  ;;  %v1022_v12 = vsel %vm1012_vm12, %v1008_v4, 1326507024  ;;  %v1025_v13 = vshll.u32 %v985_v56, 8  ;;  %v252_v14 = vand.u32 2139095040, %v3500_v2 }
  0xa8   :  { %v3586_v15 = vshrl.u32 %v934_v7, 30  ;;  %v1014_v19 = vsel %vm1012_vm12, %v1002_v53, 2102212464  ;;  %v1023_v21 = vsel %vm1011_vm13, %v1005_v54, %v1022_v12  ;;  %v993_v25 = vshrl.u32 %v3392_v40, %v3525_v63 }
  0xa9   :  { %v1024_v28 = vsel %vm1010_vm14, %v1021_v57, %v1023_v21  ;;  %v3594_v58 = vmul.u32.u64.low %v1025_v13, %v1020_v9  ;;  %v3595_v30 = vmul.u32.u64.high %v1025_v13, %v1020_v9, %v3594_v58  ;;  %v3599_v32 = vand.u32 31, %v3533_v18 }
  0xaa   :  { %v936_v34 = vshll.u32 %v3586_v15, 30  ;;  %v3602_v36 = vmul.u32.u64.low %v1025_v13, %v1024_v28  ;;  %v3603_v37 = vmul.u32.u64.high %v1025_v13, %v1024_v28, %v3602_v36  ;;  %v3605_v39 = vand.u32 31, %v573_v0 }
  0xab   :  { %v1013_v63 = vsel %vm1009_vm11, %v993_v25, %v996_v43  ;;  %v1015_v29 = vsel %vm1011_vm13, %v999_v52, %v1014_v19  ;;  %v3612_v35 = vshrl.u32 %v3523_v61, 5  ;;  %v3614_v41 = vand.u32 31, %v677_v8 }
  0xac   :  { %v148_v42 = vand.u32 2139095040, %v3498_v1  ;;  %v3617_v50 = vsub.s32 %v933_v3, %v936_v34  ;;  %v3620_v53 = vsub.s32 32, %v3530_v16  ;;  %v3623_v54 = vshrl.u32 %v3533_v18, 5 }
  0xad   :  { %v253_v55 = vshrl.u32 %v252_v14, 23  ;;  %v1035_v43 = vadd.s32 1, %v3595_v30  ;;  %v3627_v52 = vsub.s32 32, %v3599_v32  ;;  %v1016_v56 = vsel %vm1010_vm14, %v1013_v63, %v1015_v29 }
  0xae   :  { %v939_v61 = vsub.s32 0, %v3617_v50  ;;  %v769_v59 = vand.u32 2147483647, %v3496_v60  ;;  %v3633_v62 = vshrl.u32 %v573_v0, 5  ;;  %v3636_v3 = vsub.s32 32, %v3605_v39 }
  0xaf   :  { %v3638_v18 = vshrl.u32 %v677_v8, 5  ;;  %vm1034_vm15 = vc.u32 %v3603_v37, %v3594_v58  ;;  %v3643_v4 = vsub.s32 32, %v3614_v41  ;;  %v3645_v5 = vshrl.u32 %v148_v42, 23 }
  0xb0   :  { %v356_v26 = vand.u32 2139095040, %v3506_v17  ;;  %v3119_v6 = vmin.u32 %v939_v61, %v3617_v50  ;;  %v3094_v7 = vadd.s32 4294967169, %v253_v55  ;;  %v929_v0 = vadd.s32 %v3540_v24, %v3538_v22 }
  0xb1   :  { %v1032_v51 = vmul.u32 %v1025_v13, %v1016_v56  ;;  %v1036_v57 = vsel %vm1034_vm15, %v1035_v43, %v3595_v30  ;;  %v776_v9 = vand.u32 8388607, %v769_v59  ;;  %v790_v12 = vshrl.u32 %v3390_v33, %v3620_v53 }
  0xb2   :  { %v941_v8 = vclz %v3119_v6  ;;  %v793_v14 = vshrl.u32 %v3388_v27, %v3620_v53  ;;  %v787_v21 = vshrl.u32 %v3389_v31, %v3620_v53  ;;  %v795_v22 = vshll.u32 %v3388_v27, %v3530_v16 }
  0xb3   :  { %v1037_v19 = vadd.s32 %v1036_v57, %v1032_v51  ;;  %v796_v24 = vshrl.u32 %v3391_v38, %v3620_v53  ;;  %v789_v25 = vshll.u32 %v3389_v31, %v3530_v16  ;;  %v792_v28 = vshll.u32 %v3390_v33, %v3530_v16 }
  0xb4   :  { %v3120_v13 = vadd.s32 4294967294, %v941_v8  ;;  %v799_v30 = vshrl.u32 %v3393_v44, %v3620_v53  ;;  %v786_v36 = vshll.u32 %v3392_v40, %v3530_v16  ;;  %v798_v29 = vshll.u32 %v3391_v38, %v3530_v16 }
  0xb5   :  { %v1038_v34 = vadd.s32 536870912, %v1037_v19  ;;  %v797_v63 = vor.u32 %v796_v24, %v795_v22  ;;  %vm875_vm0 = vcmp.lt.s32.totalorder %v3484_v45, 0  ;;  %v959_v42 = vsub.s32 4, %v3586_v15 }
  0xb6   :  { %vm3121_vm1 = vcmp.lt.s32.totalorder %v3120_v13, 0  ;;  %v791_v55 = vor.u32 %v790_v12, %v789_v25  ;;  %v794_v43 = vor.u32 %v793_v14, %v792_v28  ;;  %v788_v6 = vor.u32 %v787_v21, %v786_v36 }
  0xb7   :  { %v944_v61 = vsel %vm3121_vm1, 0, %v3120_v13  ;;  %v1039_v56 = vshrl.u32 %v1038_v34, 30  ;;  %v800_v51 = vor.u32 %v799_v30, %v798_v29  ;;  %v777_v10 = vor.u32 8388608, %v776_v9 }
  0xb8   :  { %v945_v57 = vsub.s32 32, %v944_v61  ;;  %v949_v8 = vsub.s32 4294967266, %v944_v61  ;;  %vm804_vm2 = vcmp.lt.s32.totalorder %v3612_v35, 4  ;;  %vm3679_vm3 = vcmp.le.f32.partialorder %v873_v23, 0.7853982 }
  0xb9   :  { %v1040_v22 = vshll.u32 %v1039_v56, 30  ;;  %vm801_vm4 = vcmp.lt.s32.totalorder %v3612_v35, 1  ;;  %vm802_vm5 = vcmp.lt.s32.totalorder %v3612_v35, 2  ;;  %v810_v12 = vsel %vm804_vm2, %v797_v63, 920167782 }
  0xba   :  { %v946_v14 = vshll.u32 %v3617_v50, %v944_v61  ;;  %v947_v21 = vshrl.u32 %v929_v0, %v945_v57  ;;  %v950_v9 = vadd.s32 127, %v949_v8  ;;  %v813_v24 = vsel %vm801_vm4, %v791_v55, %v794_v43 }
  0xbb   :  { %v3690_v13 = vsub.s32 %v1037_v19, %v1040_v22  ;;  %vm803_vm6 = vcmp.lt.s32.totalorder %v3612_v35, 3  ;;  %v809_v23 = vsel %vm801_vm4, %v788_v6, %v791_v55  ;;  %v814_v25 = vsel %vm804_vm2, %v800_v51, 1326507024 }
  0xbc   :  { %v948_v28 = vor.u32 %v947_v21, %v946_v14  ;;  %v951_v30 = vshll.u32 %v950_v9, 23  ;;  %v811_v50 = vsel %vm803_vm6, %v794_v43, %v810_v12  ;;  %v815_v0 = vsel %vm803_vm6, %v797_v63, %v814_v25 }
  0xbd   :  { %v259_v34 = vadd.s32 1, %v3094_v7  ;;  %v357_v36 = vshrl.u32 %v356_v26, 23  ;;  %v1043_v19 = vsub.s32 0, %v3690_v13  ;;  %v816_v29 = vsel %vm802_vm5, %v813_v24, %v815_v0 }
  0xbe   :  { %v952_v61 = vor.u32 4788187, %v951_v30  ;;  %v785_v57 = vshrl.u32 %v3392_v40, %v3620_v53  ;;  %v806_v51 = vsel %vm804_vm2, %v794_v43, 2102212464  ;;  %v817_v8 = vshll.u32 %v777_v10, 8 }
  0xbf   :  { %v960_v22 = vsel %vm875_vm0, %v959_v42, %v3586_v15  ;;  %v3123_v7 = vmin.u32 %v1043_v19, %v3690_v13  ;;  %v1063_v26 = vsub.s32 4, %v1039_v56  ;;  %v812_v63 = vsel %vm802_vm5, %v809_v23, %v811_v50 }
  0xc0   :  { %v953_v12 = vand.u32 2147483647, %v952_v61  ;;  %v955_v14 = vcvt.s32.f32 %v948_v28  ;;  %v3714_v21 = vmul.u32.u64.low %v817_v8, %v816_v29  ;;  %v3715_v9 = vmul.u32.u64.high %v817_v8, %v816_v29, %v3714_v21 }
  0xc1   :  { %vm979_vm7 = vcmp.lt.s32.totalorder %v3486_v46, 0  ;;  %v1045_v53 = vclz %v3123_v7  ;;  %v805_v10 = vsel %vm801_vm4, %v785_v57, %v788_v6  ;;  %v807_v15 = vsel %vm803_vm6, %v791_v55, %v806_v51 }
  0xc2   :  { %v956_v42 = vmul.f32 %v955_v14, %v953_v12  ;;  %v962_v43 = vsel %vm3679_vm3, 0, %v960_v22  ;;  %v3724_v24 = vmul.u32.u64.low %v817_v8, %v812_v63  ;;  %v3725_v23 = vmul.u32.u64.high %v817_v8, %v812_v63, %v3724_v24 }
  0xc3   :  { %v3729_v25 = vadd.s32 4294967169, %v3645_v5  ;;  %v3098_v28 = vadd.s32 4294967169, %v357_v36  ;;  %v3124_v30 = vadd.s32 4294967294, %v1045_v53  ;;  %v1064_v50 = vsel %vm979_vm7, %v1063_v26, %v1039_v56 }
  0xc4   :  { %vm260_vm8 = vcmp.gt.s32.totalorder %v259_v34, 0  ;;  %v957_v6 = vxor.u32 2147483648, %v956_v42  ;;  %vm3735_vm9 = vcmp.le.f32.partialorder %v977_v20, 0.7853982  ;;  %v808_v0 = vsel %vm802_vm5, %v805_v10, %v807_v15 }
  0xc5   :  { %v966_v19 = vadd.s32 3, %v962_v43  ;;  %v1033_v5 = vadd.s32 %v3594_v58, %v3603_v37  ;;  %vm3125_vm10 = vcmp.lt.s32.totalorder %v3124_v30, 0  ;;  %vm826_vm11 = vc.u32 %v3715_v9, %v3724_v24 }
  0xc6   :  { %v958_v56 = vsel %vm875_vm0, %v957_v6, %v956_v42  ;;  %v1048_v36 = vsel %vm3125_vm10, 0, %v3124_v30  ;;  %v1066_v20 = vsel %vm3735_vm9, 0, %v1064_v50  ;;  %v827_v29 = vadd.s32 1, %v3725_v23 }
  0xc7   :  { %v961_v35 = vsel %vm3679_vm3, %v3484_v45, %v958_v56  ;;  %v1049_v61 = vsub.s32 32, %v1048_v36  ;;  %v1053_v57 = vsub.s32 4294967266, %v1048_v36  ;;  %v824_v58 = vmul.u32 %v817_v8, %v808_v0 }
  0xc8   :  { %v3753_v37 = vadd.s32 1, %v3098_v28  ;;  %3349 = vcosq.f32 %v961_v35  ;;  %v1050_v51 = vshll.u32 %v3690_v13, %v1048_v36  ;;  %v828_v22 = vsel %vm826_vm11, %v827_v29, %v3725_v23 }
  0xc9   :  { %3351 = vsinq.f32 %v961_v35  ;;  %v1051_v7 = vshrl.u32 %v1033_v5, %v1049_v61  ;;  %v1054_v26 = vadd.s32 127, %v1053_v57  ;;  %v829_v63 = vadd.s32 %v828_v22, %v824_v58 }
  0xca   :  { %v3758_v12 = vsel %vm260_vm8, %v259_v34, 0  ;;  %v3760_v14 = vand.u32 3, %v966_v19  ;;  %v3762_v16 = vand.u32 3, %v962_v43  ;;  %v1070_v21 = vadd.s32 3, %v1066_v20 }
  0xcb   :  { %v1052_v8 = vor.u32 %v1051_v7, %v1050_v51  ;;  %v1055_v53 = vshll.u32 %v1054_v26, 23  ;;  %v830_v10 = vadd.s32 536870912, %v829_v63  ;;  %v588_v13 = vshrl.u32 %v3391_v38, %v3636_v3 }
  0xcc   :  { %v3766_v15 = vand.u32 3, %v1066_v20  ;;  %v561_v42 = vand.u32 2147483647, %v3490_v48  ;;  %v579_v23 = vshrl.u32 %v3389_v31, %v3636_v3  ;;  %v582_v34 = vshrl.u32 %v3390_v33, %v3636_v3 }
  0xcd   :  { %v1056_v28 = vor.u32 4788187, %v1055_v53  ;;  %vm771_vm12 = vcmp.lt.s32.totalorder %v3496_v60, 0  ;;  %v831_v43 = vshrl.u32 %v830_v10, 30  ;;  %v585_v30 = vshrl.u32 %v3388_v27, %v3636_v3 }
  0xce   :  { %v587_v50 = vshll.u32 %v3388_v27, %v3605_v39  ;;  %v578_v6 = vshll.u32 %v3392_v40, %v3605_v39  ;;  %v581_v0 = vshll.u32 %v3389_v31, %v3605_v39  ;;  %v584_v19 = vshll.u32 %v3390_v33, %v3605_v39 }
  0xcf   :  { %v591_v5 = vshrl.u32 %v3393_v44, %v3636_v3  ;;  %vm972_vm13 = vcmp.eq.s32.totalorder %v3760_v14, 2  ;;  %vm1900_vm14 = vcmp.eq.s32.totalorder %v3762_v16, 2  ;;  %v1057_v56 = vand.u32 2147483647, %v1056_v28 }
  0xd0   :  { %v1059_v36 = vcvt.s32.f32 %v1052_v8  ;;  %v832_v20 = vshll.u32 %v831_v43, 30  ;;  %v589_v29 = vor.u32 %v588_v13, %v587_v50  ;;  %vm969_vm15 = vcmp.eq.s32.totalorder %v3760_v14, 0 }
  0xd1   :  { %vm1897_vm0 = vcmp.eq.s32.totalorder %v3762_v16, 0  ;;  %v3790_v35 = vand.u32 3, %v1070_v21  ;;  %v568_v61 = vand.u32 8388607, %v561_v42  ;;  %v580_v57 = vor.u32 %v579_v23, %v578_v6 }
  0xd2   :  { %v590_v58 = vshll.u32 %v3391_v38, %v3605_v39  ;;  %vm968_vm1 = vcmp.lt.s32.totalorder %v3760_v14, 2  ;;  %vm1896_vm2 = vcmp.lt.s32.totalorder %v3762_v16, 2  ;;  %vm2029_vm3 = vcmask 1043456  }
  0xd3   :  { %v1060_v51 = vmul.f32 %v1059_v36, %v1057_v56  ;;  %v3798_v22 = vsub.s32 %v829_v63, %v832_v20  ;;  %v583_v7 = vor.u32 %v582_v34, %v581_v0  ;;  %v586_v26 = vor.u32 %v585_v30, %v584_v19 }
  0xd4   :  { %vm965_vm4 = vweird.f32 %v3484_v45  ;;  %v855_v21 = vsub.s32 4, %v831_v43  ;;  %v577_v8 = vshrl.u32 %v3392_v40, %v3636_v3  ;;  %v592_v53 = vor.u32 %v591_v5, %v590_v58 }
  0xd5   :  { %vm596_vm5 = vcmp.lt.s32.totalorder %v3633_v62, 4  ;;  %v1061_v39 = vxor.u32 2147483648, %v1060_v51  ;;  %v835_v10 = vsub.s32 0, %v3798_v22  ;;  %vm593_vm6 = vcmp.lt.s32.totalorder %v3633_v62, 1  ;;  %v3350_v34 = vpop.eup %3349 }
  0xd6   :  { %v602_v63 = vsel %vm596_vm5, %v589_v29, 920167782  ;;  %vm3810_vm8 = vcmp.le.f32.partialorder %v769_v59, 0.7853982  ;;  %v569_v23 = vor.u32 8388608, %v568_v61  ;;  %vm594_vm10 = vcmp.lt.s32.totalorder %v3633_v62, 2  ;;  %v3352_v6 = vpop.eup %3351 }
  0xd7   :  { %vm595_vm11 = vcmp.lt.s32.totalorder %v3633_v62, 3  ;;  %v597_v3 = vsel %vm593_vm6, %v577_v8, %v580_v57  ;;  %v1062_v28 = vsel %vm979_vm7, %v1061_v39, %v1060_v51  ;;  %v3115_v30 = vmin.u32 %v835_v10, %v3798_v22 }
  0xd8   :  { %v598_v59 = vsel %vm596_vm5, %v586_v26, 2102212464  ;;  %v601_v50 = vsel %vm593_vm6, %v580_v57, %v583_v7  ;;  %v973_v0 = vxor.u32 2147483648, %v3350_v34  ;;  %v1065_v19 = vsel %vm3735_vm9, %v3486_v46, %v1062_v28 }
  0xd9   :  { %v856_v5 = vsel %vm771_vm12, %v855_v21, %v831_v43  ;;  %v603_v56 = vsel %vm595_vm11, %v586_v26, %v602_v63  ;;  %v970_v36 = vxor.u32 2147483648, %v3352_v6  ;;  %3353 = vcosq.f32 %v1065_v19 }
  0xda   :  { %v837_v20 = vclz %v3115_v30  ;;  %v606_v61 = vsel %vm596_vm5, %v592_v53, 1326507024  ;;  %v974_v57 = vsel %vm972_vm13, %v973_v0, %v3352_v6  ;;  %v1902_v58 = vsel %vm1900_vm14, %v973_v0, %v3352_v6 }
  0xdb   :  { %3355 = vsinq.f32 %v1065_v19  ;;  %v605_v55 = vsel %vm593_vm6, %v583_v7, %v586_v26  ;;  %v971_v43 = vsel %vm969_vm15, %v3350_v34, %v970_v36  ;;  %v1899_v51 = vsel %vm1897_vm0, %v3350_v34, %v970_v36 }
  0xdc   :  { %v3116_v21 = vadd.s32 4294967294, %v837_v20  ;;  %v604_v8 = vsel %vm594_vm10, %v601_v50, %v603_v56  ;;  %v975_v53 = vsel %vm968_vm1, %v971_v43, %v974_v57  ;;  %v1903_v39 = vsel %vm1896_vm2, %v1899_v51, %v1902_v58 }
  0xdd   :  { %v607_v10 = vsel %vm595_vm11, %v589_v29, %v606_v61  ;;  %v609_v26 = vshll.u32 %v569_v23, 8  ;;  %v976_v63 = vsel %vm965_vm4, nan, %v975_v53  ;;  %v3856_v34 = vsel %vm965_vm4, nan, %v1903_v39 }
  0xde   :  { %vm3117_vm7 = vcmp.lt.s32.totalorder %v3116_v21, 0  ;;  %v608_v28 = vsel %vm594_vm10, %v605_v55, %v607_v10  ;;  %3162 = vmatprep.subr.msk.mxu0 %vm2029_vm3, %v976_v63  ;;  %v599_v16 = vsel %vm595_vm11, %v583_v7, %v598_v59  ;;  %v825_v23 = vadd.s32 %v3724_v24, %v3715_v9 }
  0xdf   :  { %v840_v14 = vsel %vm3117_vm7, 0, %v3116_v21  ;;  %v3863_v30 = vmul.u32.u64.low %v609_v26, %v608_v28  ;;  %v3864_v29 = vmul.u32.u64.high %v609_v26, %v608_v28, %v3863_v30  ;;  %v3870_v6 = vsel %vm3810_vm8, 0, %v856_v5 }
  0xe0   :  { %v841_v50 = vsub.s32 32, %v840_v14  ;;  %v845_v45 = vsub.s32 4294967266, %v840_v14  ;;  %vm2003_vm9 = vcmp.eq.s32.totalorder %v3766_v15, 2  ;;  %v665_v7 = vand.u32 2147483647, %v3492_v49 }
  0xe1   :  { %v3873_v0 = vmul.u32.u64.low %v609_v26, %v604_v8  ;;  %v3874_v19 = vmul.u32.u64.high %v609_v26, %v604_v8, %v3873_v0  ;;  %vm2000_vm13 = vcmp.eq.s32.totalorder %v3766_v15, 0  ;;  %v842_v59 = vshll.u32 %v3798_v22, %v840_v14 }
  0xe2   :  { %v843_v56 = vshrl.u32 %v825_v23, %v841_v50  ;;  %v846_v9 = vadd.s32 127, %v845_v45  ;;  %v600_v24 = vsel %vm594_vm10, %v597_v3, %v599_v16  ;;  %vm1072_vm14 = vcmp.lt.s32.totalorder %v3790_v35, 2 }
  0xe3   :  { %vm1073_vm15 = vcmp.eq.s32.totalorder %v3790_v35, 0  ;;  %vm1076_vm0 = vcmp.eq.s32.totalorder %v3790_v35, 2  ;;  %vm1999_vm1 = vcmp.lt.s32.totalorder %v3766_v15, 2  ;;  %v3887_v5 = vadd.s32 3, %v3870_v6 }
  0xe4   :  { %v683_v36 = vshrl.u32 %v3389_v31, %v3643_v4  ;;  %vm1069_vm2 = vweird.f32 %v3486_v46  ;;  %v844_v22 = vor.u32 %v843_v56, %v842_v59  ;;  %v847_v20 = vshll.u32 %v846_v9, 23 }
  0xe5   :  { %vm618_vm4 = vc.u32 %v3864_v29, %v3873_v0  ;;  %v682_v62 = vshll.u32 %v3392_v40, %v3614_v41  ;;  %v616_v3 = vmul.u32 %v609_v26, %v600_v24  ;;  %v619_v61 = vadd.s32 1, %v3874_v19 }
  0xe6   :  { %v3899_v57 = vand.u32 8388607, %v665_v7  ;;  %v686_v58 = vshrl.u32 %v3390_v33, %v3643_v4  ;;  %v848_v55 = vor.u32 4788187, %v847_v20  ;;  %v3905_v43 = vshrl.u32 %v3392_v40, %v3643_v4  ;;  %v3354_v8 = vpop.eup %3353 }
  0xe7   :  { %v684_v51 = vor.u32 %v683_v36, %v682_v62  ;;  %v685_v21 = vshll.u32 %v3389_v31, %v3614_v41  ;;  %v620_v53 = vsel %vm618_vm4, %v619_v61, %v3874_v19  ;;  %v688_v39 = vshll.u32 %v3390_v33, %v3614_v41 }
  0xe8   :  { %v689_v10 = vshrl.u32 %v3388_v27, %v3643_v4  ;;  %v692_v26 = vshrl.u32 %v3391_v38, %v3643_v4  ;;  %v3356_v63 = vpop.eup %3355  ;;  %v1077_v28 = vxor.u32 2147483648, %v3354_v8  ;;  %v849_v14 = vand.u32 2147483647, %v848_v55 }
  0xe9   :  { %v851_v16 = vcvt.s32.f32 %v844_v22  ;;  %v621_v30 = vadd.s32 %v620_v53, %v616_v3  ;;  %v1074_v23 = vxor.u32 2147483648, %v3356_v63  ;;  %v687_v50 = vor.u32 %v686_v58, %v685_v21 }
  0xea   :  { %v691_v45 = vshll.u32 %v3388_v27, %v3614_v41  ;;  %v695_v19 = vshrl.u32 %v3393_v44, %v3643_v4  ;;  %v1078_v59 = vsel %vm1076_vm0, %v1077_v28, %v3356_v63  ;;  %v2005_v56 = vsel %vm2003_vm9, %v1077_v28, %v3356_v63 }
  0xeb   :  { %v852_v9 = vmul.f32 %v851_v16, %v849_v14  ;;  %v622_v24 = vadd.s32 536870912, %v621_v30  ;;  %v1075_v36 = vsel %vm1073_vm15, %v3354_v8, %v1074_v23  ;;  %v2002_v22 = vsel %vm2000_vm13, %v3354_v8, %v1074_v23 }
  0xec   :  { %v693_v20 = vor.u32 %v692_v26, %v691_v45  ;;  %v694_v62 = vshll.u32 %v3391_v38, %v3614_v41  ;;  %vm364_vm5 = vcmp.gt.s32.totalorder %v3753_v37, 0  ;;  %v1079_v4 = vsel %vm1072_vm14, %v1075_v36, %v1078_v59 }
  0xed   :  { %v2006_v3 = vsel %vm1999_vm1, %v2002_v22, %v2005_v56  ;;  %v853_v61 = vxor.u32 2147483648, %v852_v9  ;;  %v623_v58 = vshrl.u32 %v622_v24, 30  ;;  %v1080_v55 = vsel %vm1069_vm2, nan, %v1079_v4 }
  0xee   :  { %v3939_v21 = vsel %vm1069_vm2, nan, %v2006_v3  ;;  %vm563_vm6 = vcmp.lt.s32.totalorder %v3490_v48, 0  ;;  %v690_v41 = vor.u32 %v689_v10, %v688_v39  ;;  %vm697_vm10 = vcmp.lt.s32.totalorder %v3638_v18, 1  ;;  %3237 = vmatprep.subr.msk.mxu1 %vm2029_vm3, %v1080_v55 }
  0xef   :  { %v854_v15 = vsel %vm771_vm12, %v853_v61, %v852_v9  ;;  %v624_v35 = vshll.u32 %v623_v58, 30  ;;  %v696_v8 = vor.u32 %v695_v19, %v694_v62  ;;  %vm700_vm11 = vcmp.lt.s32.totalorder %v3638_v18, 4  ;;  %3238 = vmatpush3.msk.msra.mxu1 %vm2029_vm3, %v1080_v55 }
  0xf0   :  { %v857_v46 = vsel %vm3810_vm8, %v3496_v60, %v854_v15  ;;  %v673_v53 = vor.u32 8388608, %v3899_v57  ;;  %v705_v39 = vsel %vm697_vm10, %v684_v51, %v687_v50  ;;  %v706_v10 = vsel %vm700_vm11, %v693_v20, 920167782 }
  0xf1   :  { %3357 = vcosq.f32 %v857_v46  ;;  %v3956_v26 = vsub.s32 %v621_v30, %v624_v35  ;;  %vm698_vm12 = vcmp.lt.s32.totalorder %v3638_v18, 2  ;;  %vm699_vm7 = vcmp.lt.s32.totalorder %v3638_v18, 3 }
  0xf2   :  { %3359 = vsinq.f32 %v857_v46  ;;  %v702_v13 = vsel %vm700_vm11, %v690_v41, 2102212464  ;;  %v707_v63 = vsel %vm699_vm7, %v690_v41, %v706_v10  ;;  %v709_v57 = vsel %vm697_vm10, %v687_v50, %v690_v41 }
  0xf3   :  { %v627_v28 = vsub.s32 0, %v3956_v26  ;;  %v647_v14 = vsub.s32 4, %v623_v58  ;;  %v708_v16 = vsel %vm698_vm12, %v705_v39, %v707_v63  ;;  %v710_v30 = vsel %vm700_vm11, %v696_v8, 1326507024 }
  0xf4   :  { %v3970_v23 = vand.u32 3, %v3887_v5  ;;  %v3973_v45 = vand.u32 3, %v3870_v6  ;;  %v711_v19 = vsel %vm699_vm7, %v693_v20, %v710_v30  ;;  %v713_v59 = vshll.u32 %v673_v53, 8 }
  0xf5   :  { %v3107_v56 = vmin.u32 %v627_v28, %v3956_v26  ;;  %v701_v9 = vsel %vm697_vm10, %v3905_v43, %v684_v51  ;;  %v703_v24 = vsel %vm699_vm7, %v687_v50, %v702_v13  ;;  %v712_v36 = vsel %vm698_vm12, %v709_v57, %v711_v19 }
  0xf6   :  { %v3981_v22 = vmul.u32.u64.low %v713_v59, %v712_v36  ;;  %v3982_v62 = vmul.u32.u64.high %v713_v59, %v712_v36, %v3981_v22  ;;  %v3984_v5 = vmul.u32.u64.low %v713_v59, %v708_v16  ;;  %v3985_v4 = vmul.u32.u64.high %v713_v59, %v708_v16, %v3984_v5 }
  0xf7   :  { %v3989_v6 = vand.u32 31, %v3758_v12  ;;  %v629_v20 = vclz %v3107_v56  ;;  %v648_v3 = vsel %vm563_vm6, %v647_v14, %v623_v58  ;;  %v457_v43 = vand.u32 2147483647, %v3488_v47 }
  0xf8   :  { %v3997_v51 = vsel %vm364_vm5, %v3753_v37, 0  ;;  %vm1797_vm8 = vcmp.eq.s32.totalorder %v3973_v45, 2  ;;  %vm4002_vm9 = vcmp.le.f32.partialorder %v561_v42, 0.7853982  ;;  %v704_v61 = vsel %vm698_vm12, %v701_v9, %v703_v24 }
  0xf9   :  { %vm865_vm13 = vcmp.eq.s32.totalorder %v3970_v23, 0  ;;  %vm868_vm14 = vcmp.eq.s32.totalorder %v3970_v23, 2  ;;  %vm1794_vm15 = vcmp.eq.s32.totalorder %v3973_v45, 0  ;;  %v3108_v58 = vadd.s32 4294967294, %v629_v20 }
  0xfa   :  { %v475_v37 = vshrl.u32 %v3389_v31, %v3627_v52  ;;  %vm864_vm0 = vcmp.lt.s32.totalorder %v3970_v23, 2  ;;  %vm1793_vm1 = vcmp.lt.s32.totalorder %v3973_v45, 2  ;;  %v617_v42 = vadd.s32 %v3873_v0, %v3864_v29 }
  0xfb   :  { %v4019_v18 = vsel %vm4002_vm9, 0, %v648_v3  ;;  %vm722_vm2 = vc.u32 %v3982_v62, %v3984_v5  ;;  %v723_v55 = vadd.s32 1, %v3985_v4  ;;  %vm861_vm4 = vweird.f32 %v3496_v60 }
  0xfc   :  { %vm3109_vm5 = vcmp.lt.s32.totalorder %v3108_v58, 0  ;;  %v720_v41 = vmul.u32 %v713_v59, %v704_v61  ;;  %v4027_v15 = vand.u32 8388607, %v457_v43  ;;  %v474_v29 = vshll.u32 %v3392_v40, %v3599_v32 }
  0xfd   :  { %v632_v0 = vsel %vm3109_vm5, 0, %v3108_v58  ;;  %v724_v35 = vsel %vm722_vm2, %v723_v55, %v3985_v4  ;;  %v477_v8 = vshll.u32 %v3389_v31, %v3599_v32  ;;  %v478_v46 = vshrl.u32 %v3390_v33, %v3627_v52 }
  0xfe   :  { %v633_v53 = vsub.s32 32, %v632_v0  ;;  %v637_v39 = vsub.s32 4294967266, %v632_v0  ;;  %v725_v10 = vadd.s32 %v724_v35, %v720_v41  ;;  %v4036_v13 = vor.u32 %v475_v37, %v474_v29  ;;  %v3358_v63 = vpop.eup %3357 }
  0xff   :  { %v634_v57 = vshll.u32 %v3956_v26, %v632_v0  ;;  %v480_v28 = vshll.u32 %v3390_v33, %v3599_v32  ;;  %v481_v14 = vshrl.u32 %v3388_v27, %v3627_v52  ;;  %v483_v16 = vshll.u32 %v3388_v27, %v3599_v32  ;;  %v3360_v30 = vpop.eup %3359 }
 0x100   :  { %v869_v19 = vxor.u32 2147483648, %v3358_v63  ;;  %v635_v59 = vshrl.u32 %v617_v42, %v633_v53  ;;  %v638_v56 = vadd.s32 127, %v637_v39  ;;  %v726_v9 = vadd.s32 536870912, %v725_v10 }
 0x101   :  { %v866_v24 = vxor.u32 2147483648, %v3360_v30  ;;  %v479_v36 = vor.u32 %v478_v46, %v477_v8  ;;  %v484_v22 = vshrl.u32 %v3391_v38, %v3627_v52  ;;  %v487_v26 = vshrl.u32 %v3393_v44, %v3627_v52 }
 0x102   :  { %v870_v4 = vsel %vm868_vm14, %v869_v19, %v3360_v30  ;;  %v1799_v20 = vsel %vm1797_vm8, %v869_v19, %v3360_v30  ;;  %v636_v3 = vor.u32 %v635_v59, %v634_v57  ;;  %v639_v61 = vshll.u32 %v638_v56, 23 }
 0x103   :  { %vm667_vm10 = vcmp.lt.s32.totalorder %v3492_v49, 0  ;;  %v867_v58 = vsel %vm865_vm13, %v3358_v63, %v866_v24  ;;  %v1796_v37 = vsel %vm1794_vm15, %v3358_v63, %v866_v24  ;;  %v727_v42 = vshrl.u32 %v726_v9, 30 }
 0x104   :  { %v482_v55 = vor.u32 %v481_v14, %v480_v28  ;;  %v871_v41 = vsel %vm864_vm0, %v867_v58, %v870_v4  ;;  %v1800_v29 = vsel %vm1793_vm1, %v1796_v37, %v1799_v20  ;;  %v640_v0 = vor.u32 4788187, %v639_v61 }
 0x105   :  { %v486_v35 = vshll.u32 %v3391_v38, %v3599_v32  ;;  %v872_v8 = vsel %vm861_vm4, nan, %v871_v41  ;;  %v4068_v46 = vsel %vm861_vm4, nan, %v1800_v29  ;;  %vm4072_vm11 = vcmp.le.f32.partialorder %v665_v7, 0.7853982 }
 0x106   :  { %v728_v23 = vshll.u32 %v727_v42, 30  ;;  %v485_v45 = vor.u32 %v484_v22, %v483_v16  ;;  %3163 = vmatpush1.msk.msra.mxu0 %vm2029_vm3, %v872_v8  ;;  %v641_v39 = vand.u32 2147483647, %v640_v0  ;;  %v643_v63 = vcvt.s32.f32 %v636_v3 }
 0x107   :  { %v654_v32 = vadd.s32 3, %v4019_v18  ;;  %v488_v57 = vor.u32 %v487_v26, %v486_v35  ;;  %v751_v60 = vsub.s32 4, %v727_v42  ;;  %v465_v14 = vor.u32 8388608, %v4027_v15 }
 0x108   :  { %v4078_v28 = vsub.s32 %v725_v10, %v728_v23  ;;  %v473_v7 = vshrl.u32 %v3392_v40, %v3627_v52  ;;  %v644_v30 = vmul.f32 %v643_v63, %v641_v39  ;;  %vm489_vm12 = vcmp.lt.s32.totalorder %v3623_v54, 1 }
 0x109   :  { %vm491_vm7 = vcmp.lt.s32.totalorder %v3623_v54, 3  ;;  %vm492_vm8 = vcmp.lt.s32.totalorder %v3623_v54, 4  ;;  %v497_v10 = vsel %vm489_vm12, %v4036_v13, %v479_v36  ;;  %v501_v52 = vsel %vm489_vm12, %v479_v36, %v482_v55 }
 0x10a   :  { %v731_v16 = vsub.s32 0, %v4078_v28  ;;  %v494_v19 = vsel %vm492_vm8, %v482_v55, 2102212464  ;;  %v498_v59 = vsel %vm492_vm8, %v485_v45, 920167782  ;;  %v645_v56 = vxor.u32 2147483648, %v644_v30 }
 0x10b   :  { %v499_v15 = vsel %vm491_vm7, %v482_v55, %v498_v59  ;;  %v502_v9 = vsel %vm492_vm8, %v488_v57, 1326507024  ;;  %v752_v22 = vsel %vm667_vm10, %v751_v60, %v727_v42  ;;  %vm490_vm13 = vcmp.lt.s32.totalorder %v3623_v54, 2 }
 0x10c   :  { %v3111_v24 = vmin.u32 %v731_v16, %v4078_v28  ;;  %v503_v26 = vsel %vm491_vm7, %v485_v45, %v502_v9  ;;  %v646_v4 = vsel %vm563_vm6, %v645_v56, %v644_v30  ;;  %v500_v20 = vsel %vm490_vm13, %v497_v10, %v499_v15 }
 0x10d   :  { %v504_v3 = vsel %vm490_vm13, %v501_v52, %v503_v26  ;;  %v505_v61 = vshll.u32 %v465_v14, 8  ;;  %v649_v58 = vsel %vm4002_vm9, %v3490_v48, %v646_v4  ;;  %v493_v42 = vsel %vm489_vm12, %v473_v7, %v4036_v13 }
 0x10e   :  { %v733_v37 = vclz %v3111_v24  ;;  %v495_v55 = vsel %vm491_vm7, %v479_v36, %v494_v19  ;;  %3361 = vcosq.f32 %v649_v58  ;;  %v4116_v41 = vsel %vm4072_vm11, 0, %v752_v22 }
 0x10f   :  { %v4118_v29 = vmul.u32.u64.low %v505_v61, %v504_v3  ;;  %v4119_v0 = vmul.u32.u64.high %v505_v61, %v504_v3, %v4118_v29  ;;  %3363 = vsinq.f32 %v649_v58  ;;  %v4126_v23 = vadd.s32 1, %v3729_v25 }
 0x110   :  { %v3112_v35 = vadd.s32 4294967294, %v733_v37  ;;  %v4121_v50 = vmul.u32.u64.low %v505_v61, %v500_v20  ;;  %v4122_v8 = vmul.u32.u64.high %v505_v61, %v500_v20, %v4121_v50  ;;  %v4129_v13 = vshrl.u32 %v3758_v12, 5 }
 0x111   :  { %v264_v36 = vsub.s32 32, %v3989_v6  ;;  %v496_v45 = vsel %vm490_vm13, %v493_v42, %v495_v55  ;;  %v4135_v39 = vand.u32 31, %v3997_v51  ;;  %v4137_v63 = vand.u32 3, %v654_v32 }
 0x112   :  { %v721_v57 = vadd.s32 %v3984_v5, %v3982_v62  ;;  %vm3113_vm6 = vcmp.lt.s32.totalorder %v3112_v35, 0  ;;  %v4142_v25 = vadd.s32 3, %v4116_v41  ;;  %vm514_vm9 = vc.u32 %v4119_v0, %v4121_v50 }
 0x113   :  { %v736_v60 = vsel %vm3113_vm6, 0, %v3112_v35  ;;  %v249_v12 = vand.u32 2147483647, %v3500_v2  ;;  %v512_v7 = vmul.u32 %v505_v61, %v496_v45  ;;  %v515_v30 = vadd.s32 1, %v4122_v8 }
 0x114   :  { %v737_v54 = vsub.s32 32, %v736_v60  ;;  %v741_v14 = vsub.s32 4294967266, %v736_v60  ;;  %v738_v32 = vshll.u32 %v4078_v28, %v736_v60  ;;  %v265_v16 = vshrl.u32 %v3392_v40, %v264_v36 }
 0x115   :  { %v266_v62 = vshll.u32 %v3392_v40, %v3989_v6  ;;  %v267_v5 = vshrl.u32 %v3389_v31, %v264_v36  ;;  %vm660_vm14 = vcmp.eq.s32.totalorder %v4137_v63, 2  ;;  %v516_v59 = vsel %vm514_vm9, %v515_v30, %v4122_v8 }
 0x116   :  { %v739_v19 = vshrl.u32 %v721_v57, %v737_v54  ;;  %v742_v10 = vadd.s32 127, %v741_v14  ;;  %v270_v56 = vshrl.u32 %v3390_v33, %v264_v36  ;;  %vm657_vm15 = vcmp.eq.s32.totalorder %v4137_v63, 0 }
 0x117   :  { %v517_v15 = vadd.s32 %v516_v59, %v512_v7  ;;  %v256_v28 = vand.u32 8388607, %v249_v12  ;;  %v269_v52 = vshll.u32 %v3389_v31, %v3989_v6  ;;  %v273_v9 = vshrl.u32 %v3388_v27, %v264_v36 }
 0x118   :  { %vm656_vm0 = vcmp.lt.s32.totalorder %v4137_v63, 2  ;;  %v740_v24 = vor.u32 %v739_v19, %v738_v32  ;;  %v743_v22 = vshll.u32 %v742_v10, 23  ;;  %v275_v26 = vshll.u32 %v3388_v27, %v3989_v6 }
 0x119   :  { %v276_v4 = vshrl.u32 %v3391_v38, %v264_v36  ;;  %vm653_vm1 = vweird.f32 %v3490_v48  ;;  %v518_v20 = vadd.s32 536870912, %v517_v15  ;;  %v268_v3 = vor.u32 %v267_v5, %v266_v62  ;;  %v4723_v48 = vld [vmem:[%s4795_s6] sm:$0xff] }
 0x11a   :  { %v272_v61 = vshll.u32 %v3390_v33, %v3989_v6  ;;  %v279_v58 = vshrl.u32 %v3393_v44, %v264_v36  ;;  %v744_v37 = vor.u32 4788187, %v743_v22  ;;  %v271_v42 = vor.u32 %v270_v56, %v269_v52 }
 0x11b   :  { %v277_v55 = vor.u32 %v276_v4, %v275_v26  ;;  %v278_v29 = vshll.u32 %v3391_v38, %v3989_v6  ;;  %vm156_vm2 = vcmp.gt.s32.totalorder %v4126_v23, 0  ;;  %v519_v35 = vshrl.u32 %v518_v20, 30  ;;  %v4174_v57 = vpop.eup %3361 }
 0x11c   :  { %v257_v8 = vor.u32 8388608, %v256_v28  ;;  %v274_v45 = vor.u32 %v273_v9, %v272_v61  ;;  %vm281_vm4 = vcmp.lt.s32.totalorder %v4129_v13, 1  ;;  %v745_v60 = vand.u32 2147483647, %v744_v37  ;;  %v4177_v36 = vpop.eup %3363 }
 0x11d   :  { %v747_v54 = vcvt.s32.f32 %v740_v24  ;;  %v280_v14 = vor.u32 %v279_v58, %v278_v29  ;;  %vm282_vm5 = vcmp.lt.s32.totalorder %v4129_v13, 2  ;;  %v661_v7 = vxor.u32 2147483648, %v4174_v57 }
 0x11e   :  { %v520_v30 = vshll.u32 %v519_v35, 30  ;;  %vm283_vm12 = vcmp.lt.s32.totalorder %v4129_v13, 3  ;;  %vm284_vm7 = vcmp.lt.s32.totalorder %v4129_v13, 4  ;;  %v658_v6 = vxor.u32 2147483648, %v4177_v36 }
 0x11f   :  { %v748_v32 = vmul.f32 %v747_v54, %v745_v60  ;;  %v289_v62 = vsel %vm281_vm4, %v268_v3, %v271_v42  ;;  %v290_v5 = vsel %vm284_vm7, %v277_v55, 920167782  ;;  %v662_v19 = vsel %vm660_vm14, %v661_v7, %v4177_v36 }
 0x120   :  { %v4192_v10 = vsub.s32 %v517_v15, %v520_v30  ;;  %v285_v59 = vsel %vm281_vm4, %v265_v16, %v268_v3  ;;  %v291_v56 = vsel %vm283_vm12, %v274_v45, %v290_v5  ;;  %v659_v28 = vsel %vm657_vm15, %v4174_v57, %v658_v6 }
 0x121   :  { %v749_v52 = vxor.u32 2147483648, %v748_v32  ;;  %v543_v9 = vsub.s32 4, %v519_v35  ;;  %v286_v24 = vsel %vm284_vm7, %v274_v45, 2102212464  ;;  %v663_v15 = vsel %vm656_vm0, %v659_v28, %v662_v19 }
 0x122   :  { %v523_v22 = vsub.s32 0, %v4192_v10  ;;  %v292_v16 = vsel %vm282_vm5, %v289_v62, %v291_v56  ;;  %v293_v26 = vsel %vm281_vm4, %v271_v42, %v274_v45  ;;  %v664_v4 = vsel %vm653_vm1, nan, %v663_v15 }
 0x123   :  { %v750_v20 = vsel %vm667_vm10, %v749_v52, %v748_v32  ;;  %v294_v3 = vsel %vm284_vm7, %v280_v14, 1326507024  ;;  %v297_v61 = vshll.u32 %v257_v8, 8  ;;  %2067 = vmatprep.subr.mxu0 %v664_v4  ;;  %v287_v37 = vsel %vm283_vm12, %v271_v42, %v286_v24 }
 0x124   :  { %v753_v63 = vsel %vm4072_vm11, %v3492_v49, %v750_v20  ;;  %v3103_v58 = vmin.u32 %v523_v22, %v4192_v10  ;;  %v295_v29 = vsel %vm283_vm12, %v277_v55, %v294_v3  ;;  %v4235_v53 = vsel %vm156_vm2, %v4126_v23, 0 }
 0x125   :  { %3365 = vcosq.f32 %v753_v63  ;;  %v296_v45 = vsel %vm282_vm5, %v293_v26, %v295_v29  ;;  %v4228_v60 = vmul.u32.u64.low %v297_v61, %v292_v16  ;;  %v4229_v54 = vmul.u32.u64.high %v297_v61, %v292_v16, %v4228_v60 }
 0x126   :  { %3367 = vsinq.f32 %v753_v63  ;;  %v525_v8 = vclz %v3103_v58  ;;  %v4237_v14 = vmul.u32.u64.low %v297_v61, %v296_v45  ;;  %v4238_v42 = vmul.u32.u64.high %v297_v61, %v296_v45, %v4237_v14 }
 0x127   :  { %vm459_vm10 = vcmp.lt.s32.totalorder %v3488_v47, 0  ;;  %v288_v30 = vsel %vm282_vm5, %v285_v59, %v287_v37  ;;  %v4244_v32 = vsub.s32 32, %v4135_v39  ;;  %v4247_v62 = vand.u32 3, %v4142_v25 }
 0x128   :  { %v3104_v55 = vadd.s32 4294967294, %v525_v8  ;;  %v544_v5 = vsel %vm459_vm10, %v543_v9, %v519_v35  ;;  %v307_v23 = vadd.s32 1, %v4229_v54  ;;  %v4253_v19 = vand.u32 31, %v4235_v53 }
 0x129   :  { %v4256_v56 = vshrl.u32 %v3997_v51, 5  ;;  %vm4260_vm11 = vcmp.le.f32.partialorder %v457_v43, 0.7853982  ;;  %v513_v25 = vadd.s32 %v4121_v50, %v4119_v0  ;;  %v304_v35 = vmul.u32 %v297_v61, %v288_v30 }
 0x12a   :  { %vm3105_vm8 = vcmp.lt.s32.totalorder %v3104_v55, 0  ;;  %vm306_vm13 = vc.u32 %v4238_v42, %v4228_v60  ;;  %v4270_v51 = vsel %vm4260_vm11, 0, %v544_v5  ;;  %vm761_vm6 = vcmp.eq.s32.totalorder %v4247_v62, 0 }
 0x12b   :  { %v528_v59 = vsel %vm3105_vm8, 0, %v3104_v55  ;;  %v308_v43 = vsel %vm306_vm13, %v307_v23, %v4229_v54  ;;  %vm764_vm9 = vcmp.eq.s32.totalorder %v4247_v62, 2  ;;  %v353_v0 = vand.u32 2147483647, %v3506_v17 }
 0x12c   :  { %v529_v28 = vsub.s32 32, %v528_v59  ;;  %v533_v52 = vsub.s32 4294967266, %v528_v59  ;;  %v309_v9 = vadd.s32 %v308_v43, %v304_v35  ;;  %v371_v50 = vshrl.u32 %v3389_v31, %v4244_v32 }
 0x12d   :  { %vm760_vm14 = vcmp.lt.s32.totalorder %v4247_v62, 2  ;;  %v530_v24 = vshll.u32 %v4192_v10, %v528_v59  ;;  %v374_v16 = vshrl.u32 %v3390_v33, %v4244_v32  ;;  %vm757_vm15 = vweird.f32 %v3492_v49 }
 0x12e   :  { %v531_v15 = vshrl.u32 %v513_v25, %v529_v28  ;;  %v534_v22 = vadd.s32 127, %v533_v52  ;;  %v4284_v26 = vadd.s32 3, %v4270_v51  ;;  %v310_v4 = vadd.s32 536870912, %v309_v9 }
 0x12f   :  { %v370_v20 = vshll.u32 %v3392_v40, %v4135_v39  ;;  %v377_v3 = vshrl.u32 %v3388_v27, %v4244_v32  ;;  %v373_v10 = vshll.u32 %v3389_v31, %v4135_v39  ;;  %v380_v58 = vshrl.u32 %v3391_v38, %v4244_v32 }
 0x130   :  { %v532_v61 = vor.u32 %v531_v15, %v530_v24  ;;  %v535_v63 = vshll.u32 %v534_v22, 23  ;;  %v4294_v37 = vshrl.u32 %v310_v4, 30  ;;  %v360_v29 = vand.u32 8388607, %v353_v0 }
 0x131   :  { %v376_v45 = vshll.u32 %v3390_v33, %v4135_v39  ;;  %v383_v54 = vshrl.u32 %v3393_v44, %v4244_v32  ;;  %v372_v55 = vor.u32 %v371_v50, %v370_v20  ;;  %v375_v30 = vor.u32 %v374_v16, %v373_v10 }
 0x132   :  { %v4302_v8 = vpop.eup %3365  ;;  %v536_v14 = vor.u32 4788187, %v535_v63  ;;  %v379_v5 = vshll.u32 %v3388_v27, %v4135_v39  ;;  %v312_v59 = vshll.u32 %v4294_v37, 30  ;;  %v382_v28 = vshll.u32 %v3391_v38, %v4135_v39  ;;  %v2636_v63 = vld [vmem:[%s4789_s5 + $0x10] sm:$0xff] }
 0x133   :  { %v4306_v23 = vpop.eup %3367  ;;  %v765_v25 = vxor.u32 2147483648, %v4302_v8  ;;  %v378_v35 = vor.u32 %v377_v3, %v376_v45  ;;  %v539_v24 = vcvt.s32.f32 %v532_v61  ;;  %v361_v16 = vor.u32 8388608, %v360_v29  ;;  %2650 = vperm.xlu0 %3347, %v2636_v63  }
 0x134   :  { %v762_v52 = vxor.u32 2147483648, %v4306_v23  ;;  %v537_v43 = vand.u32 2147483647, %v536_v14  ;;  %v381_v15 = vor.u32 %v380_v58, %v379_v5  ;;  %v4318_v22 = vsub.s32 %v309_v9, %v312_v59  ;;  %v2689_v59 = vld [vmem:[%s4790_s7 + $0x18] sm:$0xff] }
 0x135   :  { %v766_v50 = vsel %vm764_vm9, %v765_v25, %v4306_v23  ;;  %v384_v4 = vor.u32 %v383_v54, %v382_v28  ;;  %vm385_vm0 = vcmp.lt.s32.totalorder %v4256_v56, 1  ;;  %vm388_vm2 = vcmp.lt.s32.totalorder %v4256_v56, 4 }
 0x136   :  { %v763_v39 = vsel %vm761_vm6, %v4302_v8, %v762_v52  ;;  %v540_v20 = vmul.f32 %v539_v24, %v537_v43  ;;  %v315_v61 = vsub.s32 0, %v4318_v22  ;;  %vm387_vm4 = vcmp.lt.s32.totalorder %v4256_v56, 3 }
 0x137   :  { %v767_v3 = vsel %vm760_vm14, %v763_v39, %v766_v50  ;;  %v390_v9 = vsel %vm388_vm2, %v378_v35, 2102212464  ;;  %v393_v29 = vsel %vm385_vm0, %v372_v55, %v375_v30  ;;  %v394_v45 = vsel %vm388_vm2, %v381_v15, 920167782  ;;  %2707 = vperm.xlu0 %3347, %v2689_v59  }
 0x138   :  { %v768_v10 = vsel %vm757_vm15, nan, %v767_v3  ;;  %v541_v58 = vxor.u32 2147483648, %v540_v20  ;;  %v3095_v62 = vmin.u32 %v315_v61, %v4318_v22  ;;  %v395_v54 = vsel %vm387_vm4, %v378_v35, %v394_v45 }
 0x139   :  { %3239 = vmatprep.subr.mxu1 %v768_v10  ;;  %v397_v14 = vsel %vm385_vm0, %v375_v30, %v378_v35  ;;  %v398_v5 = vsel %vm388_vm2, %v384_v4, 1326507024  ;;  %v369_v43 = vshrl.u32 %v3392_v40, %v4244_v32  ;;  %vm386_vm5 = vcmp.lt.s32.totalorder %v4256_v56, 2 }
 0x13a   :  { %v542_v28 = vsel %vm459_vm10, %v541_v58, %v540_v20  ;;  %3240 = vmatpush3.msra.mxu1 %v768_v10  ;;  %v399_v24 = vsel %vm387_vm4, %v381_v15, %v398_v5  ;;  %v317_v50 = vclz %v3095_v62  ;;  %v396_v4 = vsel %vm386_vm5, %v393_v29, %v395_v54 }
 0x13b   :  { %v545_v35 = vsel %vm4260_vm11, %v3488_v47, %v542_v28  ;;  %v401_v39 = vshll.u32 %v361_v16, 8  ;;  %v389_v20 = vsel %vm385_vm0, %v369_v43, %v372_v55  ;;  %v391_v32 = vsel %vm387_vm4, %v375_v30, %v390_v9  ;;  %v2687_v16 = vld [vmem:[%s4790_s7 + $0x8] sm:$0xff] }
 0x13c   :  { %3369 = vcosq.f32 %v545_v35  ;;  %v400_v3 = vsel %vm386_vm5, %v397_v14, %v399_v24  ;;  %v3096_v15 = vadd.s32 4294967294, %v317_v50  ;;  %v145_v55 = vand.u32 2147483647, %v3498_v1  ;;  %2697 = vperm.xlu0 %3347, %v2687_v16  }
 0x13d   :  { %3371 = vsinq.f32 %v545_v35  ;;  %v4364_v13 = vmul.u32.u64.low %v401_v39, %v400_v3  ;;  %v4365_v61 = vmul.u32.u64.high %v401_v39, %v400_v3, %v4364_v13  ;;  %v4376_v30 = vsub.s32 32, %v4253_v19 }
 0x13e   :  { %v4370_v63 = vmul.u32.u64.low %v401_v39, %v396_v4  ;;  %v4371_v10 = vmul.u32.u64.high %v401_v39, %v396_v4, %v4370_v63  ;;  %v4379_v9 = vand.u32 3, %v4284_v26  ;;  %vm3097_vm12 = vcmp.lt.s32.totalorder %v3096_v15, 0 }
 0x13f   :  { %v392_v58 = vsel %vm386_vm5, %v389_v20, %v391_v32  ;;  %v4384_v29 = vshrl.u32 %v4235_v53, 5  ;;  %v320_v45 = vsel %vm3097_vm12, 0, %v3096_v15  ;;  %v335_v62 = vsub.s32 4, %v4294_v37 }
 0x140   :  { %vm251_vm7 = vcmp.lt.s32.totalorder %v3500_v2, 0  ;;  %v305_v54 = vadd.s32 %v4228_v60, %v4238_v42  ;;  %v321_v14 = vsub.s32 32, %v320_v45  ;;  %v325_v5 = vsub.s32 4294967266, %v320_v45 }
 0x141   :  { %v408_v26 = vmul.u32 %v401_v39, %v392_v58  ;;  %vm410_vm10 = vc.u32 %v4365_v61, %v4370_v63  ;;  %v411_v56 = vadd.s32 1, %v4371_v10  ;;  %v4395_v53 = vand.u32 8388607, %v145_v55 }
 0x142   :  { %vm556_vm11 = vcmp.eq.s32.totalorder %v4379_v9, 2  ;;  %v322_v59 = vshll.u32 %v4318_v22, %v320_v45  ;;  %v323_v28 = vshrl.u32 %v305_v54, %v321_v14  ;;  %v326_v43 = vadd.s32 127, %v325_v5 }
 0x143   :  { %v163_v60 = vshrl.u32 %v3389_v31, %v4376_v30  ;;  %vm553_vm8 = vcmp.eq.s32.totalorder %v4379_v9, 0  ;;  %v4405_v42 = vsel %vm251_vm7, %v335_v62, %v4294_v37  ;;  %v412_v24 = vsel %vm410_vm10, %v411_v56, %v4371_v10 }
 0x144   :  { %v166_v35 = vshrl.u32 %v3390_v33, %v4376_v30  ;;  %v169_v22 = vshrl.u32 %v3388_v27, %v4376_v30  ;;  %vm552_vm13 = vcmp.lt.s32.totalorder %v4379_v9, 2  ;;  %v324_v50 = vor.u32 %v323_v28, %v322_v59 }
 0x145   :  { %v327_v4 = vshll.u32 %v326_v43, 23  ;;  %v413_v39 = vadd.s32 %v412_v24, %v408_v26  ;;  %v162_v20 = vshll.u32 %v3392_v40, %v4253_v19  ;;  %vm549_vm6 = vweird.f32 %v3488_v47 }
 0x146   :  { %v165_v37 = vshll.u32 %v3389_v31, %v4253_v19  ;;  %v168_v32 = vshll.u32 %v3390_v33, %v4253_v19  ;;  %v171_v3 = vshll.u32 %v3388_v27, %v4253_v19  ;;  %v172_v15 = vshrl.u32 %v3391_v38, %v4376_v30 }
 0x147   :  { %vm4426_vm9 = vcmp.le.f32.partialorder %v249_v12, 0.7853982  ;;  %v328_v16 = vor.u32 4788187, %v327_v4  ;;  %v414_v10 = vadd.s32 536870912, %v413_v39  ;;  %v153_v58 = vor.u32 8388608, %v4395_v53 }
 0x148   :  { %v164_v31 = vor.u32 %v163_v60, %v162_v20  ;;  %v167_v45 = vor.u32 %v166_v35, %v165_v37  ;;  %v170_v62 = vor.u32 %v169_v22, %v168_v32  ;;  %v173_v33 = vor.u32 %v172_v15, %v171_v3 }
 0x149   :  { %v175_v27 = vshrl.u32 %v3393_v44, %v4376_v30  ;;  %v4433_v54 = vpop.eup %3369  ;;  %v329_v14 = vand.u32 2147483647, %v328_v16  ;;  %v331_v5 = vcvt.s32.f32 %v324_v50  ;;  %v4435_v26 = vshrl.u32 %v414_v10, 30 }
 0x14a   :  { %vm180_vm14 = vcmp.lt.s32.totalorder %v4384_v29, 4  ;;  %v4438_v12 = vpop.eup %3371  ;;  %v557_v56 = vxor.u32 2147483648, %v4433_v54  ;;  %v174_v53 = vshll.u32 %v3391_v38, %v4253_v19  ;;  %vm177_vm0 = vcmp.lt.s32.totalorder %v4384_v29, 1 }
 0x14b   :  { %v186_v44 = vsel %vm180_vm14, %v173_v33, 920167782  ;;  %v554_v59 = vxor.u32 2147483648, %v4438_v12  ;;  %v332_v28 = vmul.f32 %v331_v5, %v329_v14  ;;  %v416_v43 = vshll.u32 %v4435_v26, 30 }
 0x14c   :  { %vm179_vm2 = vcmp.lt.s32.totalorder %v4384_v29, 3  ;;  %v558_v60 = vsel %vm556_vm11, %v557_v56, %v4438_v12  ;;  %v176_v24 = vor.u32 %v175_v27, %v174_v53  ;;  %v185_v38 = vsel %vm177_vm0, %v164_v31, %v167_v45 }
 0x14d   :  { %v187_v19 = vsel %vm179_vm2, %v170_v62, %v186_v44  ;;  %v555_v35 = vsel %vm553_vm8, %v4433_v54, %v554_v59  ;;  %v333_v22 = vxor.u32 2147483648, %v332_v28  ;;  %v417_v50 = vsub.s32 %v413_v39, %v416_v43 }
 0x14e   :  { %v161_v4 = vshrl.u32 %v3392_v40, %v4376_v30  ;;  %v559_v20 = vsel %vm552_vm13, %v555_v35, %v558_v60  ;;  %vm178_vm4 = vcmp.lt.s32.totalorder %v4384_v29, 2  ;;  %v182_v37 = vsel %vm180_vm14, %v170_v62, 2102212464 }
 0x14f   :  { %v189_v32 = vsel %vm177_vm0, %v167_v45, %v170_v62  ;;  %v560_v3 = vsel %vm549_vm6, nan, %v559_v20  ;;  %v334_v39 = vsel %vm251_vm7, %v333_v22, %v332_v28  ;;  %v419_v15 = vsub.s32 0, %v417_v50 }
 0x150   :  { %v188_v40 = vsel %vm178_vm4, %v185_v38, %v187_v19  ;;  %2068 = vmatpush1.msra.mxu0 %v560_v3  ;;  %v337_v30 = vsel %vm4426_vm9, %v3500_v2, %v334_v39  ;;  %v181_v9 = vsel %vm177_vm0, %v161_v4, %v164_v31  ;;  %v190_v16 = vsel %vm180_vm14, %v176_v24, 1326507024 }
 0x151   :  { %v193_v10 = vshll.u32 %v153_v58, 8  ;;  %3373 = vcosq.f32 %v337_v30  ;;  %v3099_v62 = vmin.u32 %v419_v15, %v417_v50  ;;  %v183_v27 = vsel %vm179_vm2, %v167_v45, %v182_v37  ;;  %v4498_v58 = vld [vmem:[%s4792_s3] sm:$0xff] }
 0x152   :  { %v191_v14 = vsel %vm179_vm2, %v173_v33, %v190_v16  ;;  %3375 = vsinq.f32 %v337_v30  ;;  %v4506_v45 = vsel %vm4426_vm9, 0, %v4405_v42  ;;  %v184_v60 = vsel %vm178_vm4, %v181_v9, %v183_v27 }
 0x153   :  { %v192_v5 = vsel %vm178_vm4, %v189_v32, %v191_v14  ;;  %v4491_v53 = vmul.u32.u64.low %v193_v10, %v188_v40  ;;  %v4492_v44 = vmul.u32.u64.high %v193_v10, %v188_v40, %v4491_v53  ;;  %v421_v31 = vclz %v3099_v62 }
 0x154   :  { %v4500_v28 = vmul.u32.u64.low %v193_v10, %v192_v5  ;;  %v4501_v43 = vmul.u32.u64.high %v193_v10, %v192_v5, %v4500_v28  ;;  %v3394_v24 = vmov 0.0   ;;  %vm2016_vm5 = vcmask 162816  }
 0x155   :  { %v3100_v33 = vadd.s32 4294967294, %v421_v31  ;;  %2103 = vmatprep.mubr.f32.mxu0 %v3394_v24  ;;  %v203_v38 = vadd.s32 1, %v4492_v44  ;;  %3243 = vmatprep.mubr.msk.f32.mxu1 %vm2016_vm5, %v4498_v58  ;;  %v1689_v19 = vand.u32 3, %v4116_v41  ;;  %v342_v13 = vadd.s32 3, %v4506_v45 }
 0x156   :  { %v200_v35 = vmul.u32 %v193_v10, %v184_v60  ;;  %vm202_vm7 = vc.u32 %v4501_v43, %v4491_v53  ;;  %v409_v29 = vadd.s32 %v4370_v63, %v4365_v61  ;;  %vm341_vm0 = vweird.f32 %v3500_v2  ;;  %v4575_v2 = vld [vmem:[%s4791_s0] sm:$0x3f] }
 0x157   :  { %vm3101_vm12 = vcmp.lt.s32.totalorder %v3100_v33, 0  ;;  %v204_v20 = vsel %vm202_vm7, %v203_v38, %v4492_v44  ;;  %vm1691_vm10 = vcmp.eq.s32.totalorder %v1689_v19, 0  ;;  %vm1694_vm11 = vcmp.eq.s32.totalorder %v1689_v19, 2 }
 0x158   :  { %v424_v42 = vsel %vm3101_vm12, 0, %v3100_v33  ;;  %v205_v32 = vadd.s32 %v204_v20, %v200_v35  ;;  %v1693_v41 = vsel %vm1691_vm10, %v4302_v8, %v762_v52  ;;  %v343_v15 = vand.u32 3, %v342_v13 }
 0x159   :  { %v425_v22 = vsub.s32 32, %v424_v42  ;;  %v429_v4 = vsub.s32 4294967266, %v424_v42  ;;  %v426_v37 = vshll.u32 %v417_v50, %v424_v42  ;;  %vm1690_vm8 = vcmp.lt.s32.totalorder %v1689_v19, 2 }
 0x15a   :  { %v206_v40 = vadd.s32 536870912, %v205_v32  ;;  %v1696_v61 = vsel %vm1694_vm11, %v765_v25, %v4306_v23  ;;  %vm348_vm13 = vcmp.eq.s32.totalorder %v343_v15, 2  ;;  %vm345_vm9 = vcmp.eq.s32.totalorder %v343_v15, 0 }
 0x15b   :  { %v427_v3 = vshrl.u32 %v409_v29, %v425_v22  ;;  %v430_v39 = vadd.s32 127, %v429_v4  ;;  %v1697_v9 = vsel %vm1690_vm8, %v1693_v41, %v1696_v61  ;;  %vm344_vm14 = vcmp.lt.s32.totalorder %v343_v15, 2 }
 0x15c   :  { %v4527_v16 = vshrl.u32 %v206_v40, 30  ;;  %v4531_v10 = vsel %vm757_vm15, nan, %v1697_v9  ;;  %v1483_v19 = vand.u32 3, %v4270_v51  ;;  %vm355_vm15 = vcmp.lt.s32.totalorder %v3506_v17, 0 }
 0x15d   :  { %v428_v63 = vor.u32 %v427_v3, %v426_v37  ;;  %v431_v30 = vshll.u32 %v430_v39, 23  ;;  %v439_v13 = vsub.s32 4, %v4435_v26  ;;  %vm4542_vm2 = vcmp.le.f32.partialorder %v353_v0, 0.7853982 }
 0x15e   :  { %v3374_v50 = vpop.eup %3373  ;;  %v208_v5 = vshll.u32 %v4527_v16, 30  ;;  %v1277_v22 = vand.u32 3, %v4506_v45  ;;  %vm1485_vm4 = vcmp.eq.s32.totalorder %v1483_v19, 0  ;;  %vm1488_vm12 = vcmp.eq.s32.totalorder %v1483_v19, 2 }
 0x15f   :  { %v3376_v62 = vpop.eup %3375  ;;  %v349_v52 = vxor.u32 2147483648, %v3374_v50  ;;  %v432_v27 = vor.u32 4788187, %v431_v30  ;;  %v435_v25 = vcvt.s32.f32 %v428_v63  ;;  %vm1484_vm7 = vcmp.lt.s32.totalorder %v1483_v19, 2 }
 0x160   :  { %v346_v14 = vxor.u32 2147483648, %v3376_v62  ;;  %v209_v31 = vsub.s32 %v205_v32, %v208_v5  ;;  %v1487_v51 = vsel %vm1485_vm4, %v4433_v54, %v554_v59  ;;  %v1490_v0 = vsel %vm1488_vm12, %v557_v56, %v4438_v12 }
 0x161   :  { %v350_v8 = vsel %vm348_vm13, %v349_v52, %v3376_v62  ;;  %v433_v23 = vand.u32 2147483647, %v432_v27  ;;  %v440_v37 = vsel %vm355_vm15, %v439_v13, %v4435_v26  ;;  %v1491_v32 = vsel %vm1484_vm7, %v1487_v51, %v1490_v0  ;;  %v4601_v51 = vld [vmem:[%s4792_s3 + $0x10] sm:$0xff] }
 0x162   :  { %v347_v44 = vsel %vm345_vm9, %v3374_v50, %v346_v14  ;;  %v211_v60 = vsub.s32 0, %v209_v31  ;;  %v3395_v3 = vmov 1983009808   ;;  %v4559_v41 = vsel %vm549_vm6, nan, %v1491_v32 }
 0x163   :  { %v351_v28 = vsel %vm344_vm14, %v347_v44, %v350_v8  ;;  %v436_v49 = vmul.f32 %v435_v25, %v433_v23  ;;  %v2215_v39 = vunpack.c.l.s4 %v3395_v3  ;;  %vm1279_vm10 = vcmp.eq.s32.totalorder %v1277_v22, 0 }
 0x164   :  { %v352_v33 = vsel %vm341_vm0, nan, %v351_v28  ;;  %v3091_v42 = vmin.u32 %v211_v60, %v209_v31  ;;  %vm1282_vm11 = vcmp.eq.s32.totalorder %v1277_v22, 2  ;;  %vm1278_vm13 = vcmp.lt.s32.totalorder %v1277_v22, 2 }
 0x165   :  { %2069 = vmatprep.subr.mxu0 %v352_v33  ;;  %v437_v38 = vxor.u32 2147483648, %v436_v49  ;;  %v1281_v59 = vsel %vm1279_vm10, %v3374_v50, %v346_v14  ;;  %v1284_v15 = vsel %vm1282_vm11, %v349_v52, %v3376_v62  ;;  %v442_v54 = vsel %vm4542_vm2, 0, %v440_v37  ;;  %v4613_v37 = vld [vmem:[%s4792_s3 + $0x18] sm:$0xff] }
 0x166   :  { %v213_v20 = vclz %v3091_v42  ;;  %v1285_v26 = vsel %vm1278_vm13, %v1281_v59, %v1284_v15  ;;  %v201_v56 = vadd.s32 %v4491_v53, %v4501_v43  ;;  %v2216_v63 = vunpack.c.0.s8 %v2215_v39  ;;  %v4635_v15 = vld [vmem:[%s4793_s2 + $0x8] sm:$0xff] }
 0x167   :  { %v438_v29 = vsel %vm355_vm15, %v437_v38, %v436_v49  ;;  %v4567_v47 = vsel %vm341_vm0, nan, %v1285_v26  ;;  %v446_v30 = vadd.s32 3, %v442_v54  ;;  %vm445_vm14 = vweird.f32 %v3506_v17 }
 0x168   :  { %v441_v4 = vsel %vm4542_vm2, %v3506_v17, %v438_v29  ;;  %v3092_v45 = vadd.s32 4294967294, %v213_v20  ;;  %v4570_v14 = vsub.s32 %v2216_v63, %v3473_v11  ;;  %vm147_vm15 = vcmp.lt.s32.totalorder %v3498_v1, 0 }
 0x169   :  { %3377 = vcosq.f32 %v441_v4  ;;  %v447_v5 = vand.u32 3, %v446_v30  ;;  %v231_v13 = vsub.s32 4, %v4527_v16  ;;  %vm4586_vm2 = vcmp.le.f32.partialorder %v145_v55, 0.7853982 }
 0x16a   :  { %3379 = vsinq.f32 %v441_v4  ;;  %vm3093_vm8 = vcmp.lt.s32.totalorder %v3092_v45, 0  ;;  %v4593_v4 = vld [vmem:[%s4792_s3 + $0x8] sm:$0xff]  ;;  %vm2242_vm4 = vcmask 1041408   ;;  %v1380_v0 = vand.u32 3, %v442_v54 }
 0x16b   :  { %v216_v12 = vsel %vm3093_vm8, 0, %v3092_v45  ;;  %vm452_vm6 = vcmp.eq.s32.totalorder %v447_v5, 2  ;;  %vm449_vm9 = vcmp.eq.s32.totalorder %v447_v5, 0  ;;  %vm448_vm0 = vcmp.lt.s32.totalorder %v447_v5, 2  ;;  %v4625_v45 = vld [vmem:[%s4793_s2] sm:$0xff] }
 0x16c   :  { %v217_v40 = vsub.s32 32, %v216_v12  ;;  %v221_v61 = vsub.s32 4294967266, %v216_v12  ;;  %v218_v9 = vshll.u32 %v209_v31, %v216_v12  ;;  %v2220_v31 = vrot.slane %v4575_v2, %v4570_v14 }
 0x16d   :  { %v232_v55 = vsel %vm147_vm15, %v231_v13, %v4527_v16  ;;  %vm1382_vm12 = vcmp.eq.s32.totalorder %v1380_v0, 0  ;;  %vm1385_vm7 = vcmp.eq.s32.totalorder %v1380_v0, 2  ;;  %vm2229_vm10 = vcmask 15360  }
 0x16e   :  { %v219_v27 = vshrl.u32 %v201_v56, %v217_v40  ;;  %v222_v50 = vadd.s32 127, %v221_v61  ;;  %v2228_v42 = vcombine.high %v2220_v31, %v2220_v31  ;;  %v234_v16 = vsel %vm4586_vm2, 0, %v232_v55 }
 0x16f   :  { %v238_v39 = vadd.s32 3, %v234_v16  ;;  %vm1381_vm11 = vcmp.lt.s32.totalorder %v1380_v0, 2  ;;  %v2213_v56 = vcombine.high %v4575_v2, %v4575_v2  ;;  %v1174_v5 = vand.u32 3, %v234_v16 }
 0x170   :  { %v220_v62 = vor.u32 %v219_v27, %v218_v9  ;;  %v223_v52 = vshll.u32 %v222_v50, 23  ;;  %v2011_v50 = vld [vmem:[%s4793_s2 + $0x18] sm:$0xff] }
 0x171   :  { %v239_v54 = vand.u32 3, %v238_v39  ;;  %v2227_v30 = vrot.slane %v2213_v56, %v4570_v14  ;;  %v1586_v14 = vand.u32 3, %v4019_v18 }
 0x172   :  { %v224_v8 = vor.u32 4788187, %v223_v52  ;;  %v227_v43 = vcvt.s32.f32 %v220_v62  ;;  %v2423_v62 = vld [vmem:[%s4794_s4] sm:$0xff]  ;;  %v2425_v52 = vld [vmem:[%s4794_s4 + $0x10] sm:$0xff] }
 0x173   :  { %vm244_vm8 = vcmp.eq.s32.totalorder %v239_v54, 2  ;;  %vm241_vm13 = vcmp.eq.s32.totalorder %v239_v54, 0 }
 0x174   :  { %v225_v53 = vand.u32 2147483647, %v224_v8 }
 0x176   :  { %v3378_v23 = vpop.eup %3377  ;;  %v228_v49 = vmul.f32 %v227_v43, %v225_v53 }
 0x177   :  { %v3380_v25 = vpop.eup %3379  ;;  %v453_v44 = vxor.u32 2147483648, %v3378_v23 }
 0x178   :  { %v450_v28 = vxor.u32 2147483648, %v3380_v25  ;;  %v229_v38 = vxor.u32 2147483648, %v228_v49 }
 0x179   :  { %v454_v33 = vsel %vm452_vm6, %v453_v44, %v3380_v25  ;;  %v1387_v3 = vsel %vm1385_vm7, %v453_v44, %v3380_v25  ;;  %vm240_vm6 = vcmp.lt.s32.totalorder %v239_v54, 2 }
 0x17a   :  { %v451_v60 = vsel %vm449_vm9, %v3378_v23, %v450_v28  ;;  %v230_v22 = vsel %vm147_vm15, %v229_v38, %v228_v49  ;;  %v1384_v32 = vsel %vm1382_vm12, %v3378_v23, %v450_v28  ;;  %vm237_vm9 = vweird.f32 %v3498_v1 }
 0x17b   :  { %v455_v19 = vsel %vm448_vm0, %v451_v60, %v454_v33  ;;  %v233_v20 = vsel %vm4586_vm2, %v3498_v1, %v230_v22  ;;  %v1388_v59 = vsel %vm1381_vm11, %v1384_v32, %v1387_v3  ;;  %vm1591_vm0 = vcmp.eq.s32.totalorder %v1586_v14, 2 }
 0x17c   :  { %v456_v35 = vsel %vm445_vm14, nan, %v455_v19  ;;  %3381 = vcosq.f32 %v233_v20  ;;  %v1389_v12 = vsel %vm445_vm14, nan, %v1388_v59  ;;  %vm1588_vm14 = vcmp.eq.s32.totalorder %v1586_v14, 0 }
 0x17d   :  { %3241 = vmatprep.subr.mxu1 %v456_v35  ;;  %3383 = vsinq.f32 %v233_v20  ;;  %v1590_v18 = vsel %vm1588_vm14, %v4174_v57, %v658_v6  ;;  %v1593_v8 = vsel %vm1591_vm0, %v661_v7, %v4177_v36  ;;  %vm1587_vm15 = vcmp.lt.s32.totalorder %v1586_v14, 2 }
 0x17e   :  { %3242 = vmatpush3.msra.mxu1 %v456_v35  ;;  %vm1176_vm2 = vcmp.eq.s32.totalorder %v1174_v5, 0  ;;  %v1594_v23 = vsel %vm1587_vm15, %v1590_v18, %v1593_v8  ;;  %vm1175_vm12 = vcmp.lt.s32.totalorder %v1174_v5, 2  ;;  %v2683_v8 = vld [vmem:[%s4795_s6 + $0x8] sm:$0xff] }
 0x17f   :  { %3244 = vmatmul.mubr.msk.f32.vlgmr.msra.gmra.mxu1 %vm2016_vm5, %v4593_v4  ;;  %3173 = vmatprep.subr.msk.mxu1 %vm2242_vm4, %v2228_v42  ;;  %v1595_v57 = vsel %vm653_vm1, nan, %v1594_v23  ;;  %vm3396_vm1 = vmmov 0  }
 0x180   :  { %3174 = vmatpush1.msk.msra.mxu1 %vm2242_vm4, %v2220_v31  ;;  %3246 = vmatprep.mubr.msk.f32.mxu1 %vm2016_vm5, %v4601_v51 }
 0x181   :  { %3257 = vmatprep.subr.msk.mxu1 %vm2029_vm3, %v3939_v21 }
 0x183   :  { %3247 = vmatmul.mubr.msk.f32.gmra.mxu1 %vm2016_vm5, %v4613_v37 }
 0x184   :  { %2313 = vmatprep.mubr.f32.mxu1 %v3394_v24 }
 0x187   :  { %3175 = vmatmul.mubr.msk.f32.vlgmr.msra.gmra.mxu1 %vm2229_vm10, %v4625_v45 }
 0x188   :  { %3258 = vmatpush3.msk.msra.mxu1 %vm2029_vm3, %v3939_v21  ;;  %2319 = vmatprep.mubr.f32.mxu1 %v3394_v24 }
 0x189   :  { %3259 = vmatprep.subr.mxu1 %v4531_v10  ;;  %v3382_v26 = vpop.eup %3381 }
 0x18a   :  { %3260 = vmatpush3.msra.mxu1 %v4531_v10  ;;  %v3384_v21 = vpop.eup %3383  ;;  %v245_v40 = vxor.u32 2147483648, %v3382_v26  ;;  %v2010_v10 = vld [vmem:[%s4793_s2 + $0x10] sm:$0xff] }
 0x18b   :  { %3261 = vmatprep.subr.mxu1 %v1389_v12  ;;  %3176 = vmatmul.mubr.msk.f32.gmra.mxu1 %vm2229_vm10, %v4635_v15  ;;  %v242_v61 = vxor.u32 2147483648, %v3384_v21 }
 0x18c   :  { %3262 = vmatpush3.msra.mxu1 %v1389_v12  ;;  %2325 = vmatprep.mubr.f32.mxu1 %v3394_v24  ;;  %v246_v17 = vsel %vm244_vm8, %v245_v40, %v3384_v21 }
 0x18d   :  { %v243_v63 = vsel %vm241_vm13, %v3382_v26, %v242_v61  ;;  %v1178_v53 = vsel %vm1176_vm2, %v3382_v26, %v242_v61 }
 0x18e   :  { %v247_v9 = vsel %vm240_vm6, %v243_v63, %v246_v17 }
 0x18f   :  { %3177 = vmatmul.mubr.msk.f32.gmra.mxu1 %vm2229_vm10, %v2010_v10  ;;  %v248_v27 = vsel %vm237_vm9, nan, %v247_v9 }
 0x190   :  { %2331 = vmatprep.mubr.f32.mxu1 %v3394_v24  ;;  %2070 = vmatpush1.msra.mxu0 %v248_v27 }
 0x191   :  { %3164 = vmatmul.mubr.msk.f32.vlgmr.msra.gmra.mxu0 %vm2016_vm5, %v4498_v58  ;;  %3249 = vmatprep.subr.msk.mxu0 %vm2242_vm4, %v2227_v30  ;;  %v2424_v58 = vld [vmem:[%s4794_s4 + $0x8] sm:$0xff] }
 0x192   :  { %3250 = vmatpush3.msk.msra.mxu0 %vm2242_vm4, %v2227_v30  ;;  %2109 = vmatprep.mubr.f32.mxu0 %v3394_v24  ;;  %vm1179_vm4 = vcmp.eq.s32.totalorder %v1174_v5, 2 }
 0x193   :  { %3184 = vmatprep.subr.msk.mxu0 %vm2029_vm3, %v3856_v34  ;;  %3178 = vmatmul.mubr.msk.f32.gmra.mxu1 %vm2229_vm10, %v2011_v50  ;;  %v2426_v34 = vld [vmem:[%s4794_s4 + $0x18] sm:$0xff]  ;;  %v1181_v43 = vsel %vm1179_vm4, %v245_v40, %v3384_v21 }
 0x194   :  { %3263 = vmatprep.mubr.msk.f32.mxu1 %vm2016_vm5, %v2423_v62  ;;  %v1182_v36 = vsel %vm1175_vm12, %v1178_v53, %v1181_v43  ;;  %v2684_v43 = vld [vmem:[%s4795_s6 + $0x10] sm:$0xff] }
 0x195   :  { %3165 = vmatmul.mubr.msk.f32.gmra.mxu0 %vm2016_vm5, %v4593_v4  ;;  %v1183_v7 = vsel %vm237_vm9, nan, %v1182_v36 }
 0x196   :  { %2115 = vmatprep.mubr.f32.mxu0 %v3394_v24 }
 0x197   :  { %3264 = vmatmul.mubr.msk.f32.vlgmr.msra.gmra.mxu1 %vm2016_vm5, %v2424_v58 }
 0x198   :  { %3266 = vmatprep.mubr.msk.f32.mxu1 %vm2016_vm5, %v2425_v52 }
 0x199   :  { %3166 = vmatmul.mubr.msk.f32.gmra.mxu0 %vm2016_vm5, %v4601_v51  ;;  %v4737_v51 = vpop.permute.xlu1 %2655 }
 0x19a   :  { %2121 = vmatprep.mubr.f32.mxu0 %v3394_v24 }
 0x19b   :  { %3267 = vmatmul.mubr.msk.f32.gmra.mxu1 %vm2016_vm5, %v2426_v34 }
 0x19c   :  { %2787 = vmatprep.mubr.f32.mxu1 %v3394_v24 }
 0x19d   :  { %3167 = vmatmul.mubr.msk.f32.gmra.mxu0 %vm2016_vm5, %v4613_v37 }
 0x19e   :  { %3251 = vmatprep.mubr.msk.f32.mxu0 %vm2229_vm10, %v4625_v45  ;;  %v4739_v45 = vpop.permute.xlu1 %2645 }
 0x1a1   :  { %3252 = vmatmul.mubr.msk.f32.vlgmr.msra.gmra.mxu0 %vm2229_vm10, %v4635_v15 }
 0x1a2   :  { %3185 = vmatpush1.msk.msra.mxu0 %vm2029_vm3, %v4068_v46  ;;  %3254 = vmatprep.mubr.msk.f32.mxu0 %vm2229_vm10, %v2010_v10  ;;  %vm2710_vm3 = vcmask 261120   ;;  %v2641_v27 = vpop.permute.xlu1 %2640 }
 0x1a3   :  { %2476 = vmatprep.subr.mxu0 %v1595_v57 }
 0x1a4   :  { %2477 = vmatpush1.msra.mxu0 %v4559_v41 }
 0x1a5   :  { %2478 = vmatprep.subr.mxu0 %v4567_v47  ;;  %3255 = vmatmul.mubr.msk.f32.gmra.mxu0 %vm2229_vm10, %v2011_v50 }
 0x1a6   :  { %2479 = vmatpush1.msra.mxu0 %v1183_v7  ;;  %2512 = vmatprep.mubr.f32.mxu0 %v3394_v24 }
 0x1a9   :  { %3186 = vmatmul.mubr.msk.f32.vlgmr.msra.gmra.mxu0 %vm2016_vm5, %v2423_v62 }
 0x1aa   :  { %2518 = vmatprep.mubr.f32.mxu0 %v3394_v24 }
 0x1ad   :  { %3187 = vmatmul.mubr.msk.f32.gmra.mxu0 %vm2016_vm5, %v2424_v58 }
 0x1ae   :  { %2524 = vmatprep.mubr.f32.mxu0 %v3394_v24  ;;  %v2651_v21 = vpop.permute.xlu0 %2650 }
 0x1b1   :  { %3188 = vmatmul.mubr.msk.f32.gmra.mxu0 %vm2016_vm5, %v2425_v52 }
 0x1b2   :  { %2530 = vmatprep.mubr.f32.mxu0 %v3394_v24 }
 0x1b5   :  { %3189 = vmatmul.mubr.msk.f32.gmra.mxu0 %vm2016_vm5, %v2426_v34 }
 0x1b6   :  { %3277 = vmatprep.mubr.msk.f32.mxu0 %vm2710_vm3, %v4723_v48 }
 0x23f   :  { %v3245_v1 = vpop.f32.mrf.mxu1 }
 0x241   :  { %v2194_v46 = vpop.f32.mrf.mxu1 }
 0x243   :  { %v3248_v6 = vpop.f32.mrf.mxu1 }
 0x245   :  { %v2204_v41 = vpop.f32.mrf.mxu1 }
 0x247   :  { %v4727_v47 = vpop.f32.mrf.mxu1 }
 0x249   :  { %v4729_v25 = vpop.f32.mrf.mxu1 }
 0x24b   :  { %v4731_v44 = vpop.f32.mrf.mxu1 }
 0x24d   :  { %v2323_v2 = vpop.f32.mrf.mxu1 }
 0x24f   :  { %v2327_v31 = vpop.f32.mrf.mxu1 }
 0x251   :  { %v2329_v28 = vpop.f32.mrf.mxu1  ;;  %v4733_v49 = vpop.f32.mrf.mxu0 }
 0x253   :  { %v4735_v33 = vpop.f32.mrf.mxu0  ;;  %v2333_v60 = vpop.f32.mrf.mxu1 }
 0x255   :  { %v2111_v38 = vpop.f32.mrf.mxu0  ;;  %v2335_v13 = vpop.f32.mrf.mxu1 }
 0x257   :  { %v2113_v19 = vpop.f32.mrf.mxu0  ;;  %v3265_v29 = vpop.f32.mrf.mxu1 }
 0x258   :  { %v2324_v7 = vadd.f32 %v2323_v2, %v2113_v19  ;;  %v2316_v19 = vadd.f32 %v4727_v47, %v4733_v49 }
 0x259   :  { %v2117_v42 = vpop.f32.mrf.mxu0  ;;  %v2603_v20 = vpop.f32.mrf.mxu1 }
 0x25a   :  { %v2328_v57 = vadd.f32 %v2327_v31, %v2117_v42  ;;  %v2318_v31 = vadd.f32 %v4729_v25, %v4735_v33 }
 0x25b   :  { %v2119_v35 = vpop.f32.mrf.mxu0  ;;  %v3268_v37 = vpop.f32.mrf.mxu1 }
 0x25c   :  { %v2330_v23 = vadd.f32 %v2329_v28, %v2119_v35  ;;  %v2685_v28 = vld [vmem:[%s4795_s6 + $0x18] sm:$0xff] }
 0x25d   :  { %v2123_v22 = vpop.f32.mrf.mxu0  ;;  %v2613_v59 = vpop.f32.mrf.mxu1 }
 0x25e   :  { %v2334_v53 = vadd.f32 %v2333_v60, %v2123_v22 }
 0x25f   :  { %v2125_v4 = vpop.f32.mrf.mxu0 }
 0x261   :  { %v3253_v55 = vpop.f32.mrf.mxu0 }
 0x262   :  { %v2410_v32 = vadd.f32 %v3253_v55, %v3245_v1  ;;  %v2336_v1 = vadd.f32 %v2335_v13, %v2125_v4 }
 0x263   :  { %v2404_v0 = vpop.f32.mrf.mxu0 }
 0x264   :  { %v2405_v15 = vadd.f32 %v2404_v0, %v2194_v46  ;;  %v2627_v12 = vadd.f32 %v3265_v29, %v2410_v32 }
 0x265   :  { %v3256_v16 = vpop.f32.mrf.mxu0 }
 0x266   :  { %v2420_v3 = vadd.f32 %v3256_v16, %v3248_v6  ;;  %v2624_v40 = vadd.f32 %v2603_v20, %v2405_v15  ;;  %v2663_v63 = vadd.f32 %v4739_v45, %v2627_v12 }
 0x267   :  { %v2414_v39 = vpop.f32.mrf.mxu0 }
 0x268   :  { %v2415_v54 = vadd.f32 %v2414_v39, %v2204_v41  ;;  %v2633_v26 = vadd.f32 %v3268_v37, %v2420_v3  ;;  %v2660_v62 = vadd.f32 %v2641_v27, %v2624_v40  ;;  %v2675_v14 = vmax.f32 %v2663_v63, 0.0 }
 0x269   :  { %v2514_v56 = vpop.f32.mrf.mxu0  ;;  %v2322_v41 = vadd.f32 %v4731_v44, %v2111_v38 }
 0x26a   :  { %v2669_v10 = vadd.f32 %v4737_v51, %v2633_v26  ;;  %v2630_v61 = vadd.f32 %v2613_v59, %v2415_v54  ;;  %v2672_v5 = vmax.f32 %v2660_v62, 0.0  ;;  %v2622_v22 = vadd.f32 %v2514_v56, %v2316_v19 }
 0x26b   :  { %v2516_v17 = vpop.f32.mrf.mxu0  ;;  %v3397_v19 = vmov 1966171168  }
 0x26c   :  { %v2681_v30 = vmax.f32 %v2669_v10, 0.0  ;;  %v2666_v9 = vadd.f32 %v2651_v21, %v2630_v61  ;;  %v2623_v44 = vadd.f32 %v2516_v17, %v2318_v31  ;;  %v2658_v37 = vadd.f32 %v2641_v27, %v2622_v22 }
 0x26d   :  { %v2520_v50 = vpop.f32.mrf.mxu0 }
 0x26e   :  { %3269 = vmatprep.subr.mxu0 %v2681_v30  ;;  %v2678_v58 = vmax.f32 %v2666_v9, 0.0  ;;  %v2625_v13 = vadd.f32 %v2520_v50, %v2322_v41  ;;  %v2659_v47 = vadd.f32 %v2641_v27, %v2623_v44  ;;  %v2670_v39 = vmax.f32 %v2658_v37, 0.0  ;;  %v2909_v27 = vld [vmem:[%s4796_s8] sm:$0x1] }
 0x26f   :  { %v2522_v52 = vpop.f32.mrf.mxu0  ;;  %3270 = vmatpush3.msra.mxu0 %v2681_v30 }
 0x270   :  { %3271 = vmatprep.subr.mxu0 %v2678_v58  ;;  %v2626_v60 = vadd.f32 %v2522_v52, %v2324_v7  ;;  %v2661_v55 = vadd.f32 %v4739_v45, %v2625_v13  ;;  %v2671_v3 = vmax.f32 %v2659_v47, 0.0  ;;  %v3059_v13 = vunpack.c.l.s4 %v3397_v19 }
 0x271   :  { %v2526_v34 = vpop.f32.mrf.mxu0  ;;  %3272 = vmatpush3.msra.mxu0 %v2678_v58 }
 0x272   :  { %3273 = vmatprep.subr.mxu0 %v2675_v14  ;;  %v2628_v29 = vadd.f32 %v2526_v34, %v2328_v57  ;;  %v2662_v25 = vadd.f32 %v4739_v45, %v2626_v60  ;;  %v2708_v45 = vpop.permute.xlu0 %2707 }
 0x273   :  { %v2528_v18 = vpop.f32.mrf.mxu0  ;;  %3274 = vmatpush3.msra.mxu0 %v2675_v14 }
 0x274   :  { %3275 = vmatprep.subr.mxu0 %v2672_v5  ;;  %v2629_v46 = vadd.f32 %v2528_v18, %v2330_v23  ;;  %v2664_v4 = vadd.f32 %v2651_v21, %v2628_v29  ;;  %v2674_v32 = vmax.f32 %v2662_v25, 0.0 }
 0x275   :  { %v2532_v36 = vpop.f32.mrf.mxu0  ;;  %3276 = vmatpush3.msra.mxu0 %v2672_v5 }
 0x276   :  { %v2631_v6 = vadd.f32 %v2532_v36, %v2334_v53  ;;  %3278 = vmatmul.mubr.msk.f32.vlgmr.msra.gmra.mxu0 %vm2710_vm3, %v2683_v8  ;;  %v2665_v38 = vadd.f32 %v2651_v21, %v2629_v46  ;;  %v2676_v16 = vmax.f32 %v2664_v4, 0.0  ;;  %v2698_v26 = vpop.permute.xlu0 %2697 }
 0x277   :  { %v2534_v20 = vpop.f32.mrf.mxu0  ;;  %3280 = vmatprep.mubr.msk.f32.mxu0 %vm2710_vm3, %v2684_v43 }
 0x278   :  { %v2632_v2 = vadd.f32 %v2534_v20, %v2336_v1  ;;  %v2667_v42 = vadd.f32 %v4737_v51, %v2631_v6  ;;  %v2677_v49 = vmax.f32 %v2665_v38, 0.0 }
 0x27a   :  { %v2668_v35 = vadd.f32 %v4737_v51, %v2632_v2  ;;  %3281 = vmatmul.mubr.msk.f32.gmra.mxu0 %vm2710_vm3, %v2685_v28  ;;  %v2679_v0 = vmax.f32 %v2667_v42, 0.0  ;;  %v2673_v51 = vmax.f32 %v2661_v55, 0.0  ;;  %v3060_v42 = vunpack.c.0.s8 %v3059_v13 }
 0x27b   :  { %2977 = vmatprep.mubr.f32.mxu0 %v3394_v24  ;;  %v4817_v55 = vlaneseq }
 0x27c   :  { %v2680_v33 = vmax.f32 %v2668_v35, 0.0  ;;  %v3063_v44 = vsub.s32 %v3060_v42, %v3473_v11 }
 0x27d   :  { %vm3083_vm5 = vcmp.lt.s32.totalorder %v4817_v55, 384 }
 0x27e   :  { %2747 = vmatprep.subr.mxu1 %v2680_v33 }
 0x27f   :  { %2748 = vmatpush1.msra.mxu1 %v2679_v0 }
 0x280   :  { %2749 = vmatprep.subr.mxu1 %v2677_v49 }
 0x281   :  { %2750 = vmatpush1.msra.mxu1 %v2676_v16 }
 0x282   :  { %2751 = vmatprep.subr.mxu1 %v2674_v32 }
 0x283   :  { %2752 = vmatpush1.msra.mxu1 %v2673_v51 }
 0x284   :  { %2753 = vmatprep.subr.mxu1 %v2671_v3 }
 0x285   :  { %2754 = vmatpush1.msra.mxu1 %v2670_v39 }
 0x286   :  { %3195 = vmatmul.mubr.msk.f32.vlgmr.msra.gmra.mxu1 %vm2710_vm3, %v4723_v48  ;;  %3283 = vmatprep.subr.mxu1 %v3394_v24  ;;  %v2703_v48 = vpop.permute.xlu1 %2702 }
 0x287   :  { %2793 = vmatprep.mubr.f32.mxu1 %v3394_v24 }
 0x28a   :  { %3196 = vmatmul.mubr.msk.f32.gmra.mxu1 %vm2710_vm3, %v2683_v8  ;;  %v2693_v61 = vpop.permute.xlu1 %2692 }
 0x28b   :  { %2799 = vmatprep.mubr.f32.mxu1 %v3394_v24 }
 0x28e   :  { %3197 = vmatmul.mubr.msk.f32.gmra.mxu1 %vm2710_vm3, %v2684_v43 }
 0x28f   :  { %2805 = vmatprep.mubr.f32.mxu1 %v3394_v24 }
 0x292   :  { %3198 = vmatmul.mubr.msk.f32.gmra.mxu1 %vm2710_vm3, %v2685_v28 }
 0x293   :  { %3291 = vmatprep.mubr.msk.f32.mxu1 %vm3396_vm1, %v3394_v24 }
 0x336   :  { %v3279_v59 = vpop.f32.mrf.mxu0 }
 0x337   :  { %v2884_v21 = vadd.f32 %v3279_v59, %v2698_v26 }
 0x338   :  { %v2878_v15 = vpop.f32.mrf.mxu0 }
 0x339   :  { %v2879_v17 = vadd.f32 %v2878_v15, %v2693_v61  ;;  %v2902_v30 = vmax.f32 %v2884_v21, 0.0 }
 0x33a   :  { %v3282_v54 = vpop.f32.mrf.mxu0 }
 0x33b   :  { %v2894_v12 = vadd.f32 %v3282_v54, %v2708_v45  ;;  %v2899_v9 = vmax.f32 %v2879_v17, 0.0 }
 0x33c   :  { %v2888_v56 = vpop.f32.mrf.mxu0 }
 0x33d   :  { %v2908_v40 = vmax.f32 %v2894_v12, 0.0  ;;  %v2889_v10 = vadd.f32 %v2888_v56, %v2703_v48 }
 0x33f   :  { %v2905_v63 = vmax.f32 %v2889_v10, 0.0  ;;  %3284 = vmatpush3.msra.mxu1 %v2908_v40 }
 0x340   :  { %3285 = vmatprep.subr.mxu1 %v3394_v24 }
 0x341   :  { %3286 = vmatpush3.msra.mxu1 %v2905_v63 }
 0x342   :  { %3287 = vmatprep.subr.mxu1 %v3394_v24 }
 0x343   :  { %3288 = vmatpush3.msra.mxu1 %v2902_v30 }
 0x344   :  { %3289 = vmatprep.subr.mxu1 %v3394_v24 }
 0x345   :  { %3290 = vmatpush3.msra.mxu1 %v2899_v9 }
 0x346   :  { %v2789_v50 = vpop.f32.mrf.mxu1  ;;  %3292 = vmatmul.mubr.msk.f32.vlgmr.msra.gmra.mxu1 %vm2710_vm3, %v2909_v27 }
 0x347   :  { %v2790_v6 = vadd.f32 %v2789_v50, %v2693_v61 }
 0x348   :  { %v2791_v62 = vpop.f32.mrf.mxu1 }
 0x349   :  { %v2792_v1 = vadd.f32 %v2791_v62, %v2693_v61  ;;  %v2897_v31 = vmax.f32 %v2790_v6, 0.0 }
 0x34a   :  { %v2795_v58 = vpop.f32.mrf.mxu1 }
 0x34b   :  { %v2796_v36 = vadd.f32 %v2795_v58, %v2698_v26  ;;  %v2898_v28 = vmax.f32 %v2792_v1, 0.0 }
 0x34c   :  { %v2797_v52 = vpop.f32.mrf.mxu1 }
 0x34d   :  { %v2798_v24 = vadd.f32 %v2797_v52, %v2698_v26  ;;  %v2900_v20 = vmax.f32 %v2796_v36, 0.0 }
 0x34e   :  { %v2801_v14 = vpop.f32.mrf.mxu1 }
 0x34f   :  { %v2802_v43 = vadd.f32 %v2801_v14, %v2703_v48  ;;  %v2901_v29 = vmax.f32 %v2798_v24, 0.0 }
 0x350   :  { %v2803_v34 = vpop.f32.mrf.mxu1 }
 0x351   :  { %v2804_v23 = vadd.f32 %v2803_v34, %v2703_v48  ;;  %v2903_v41 = vmax.f32 %v2802_v43, 0.0 }
 0x352   :  { %v2807_v5 = vpop.f32.mrf.mxu1 }
 0x353   :  { %v2808_v18 = vadd.f32 %v2807_v5, %v2708_v45  ;;  %v2904_v46 = vmax.f32 %v2804_v23, 0.0 }
 0x354   :  { %v2809_v8 = vpop.f32.mrf.mxu1 }
 0x355   :  { %v2810_v53 = vadd.f32 %v2809_v8, %v2708_v45  ;;  %v2906_v7 = vmax.f32 %v2808_v18, 0.0 }
 0x357   :  { %v2907_v57 = vmax.f32 %v2810_v53, 0.0 }
 0x359   :  { %2937 = vmatprep.subr.mxu0 %v2907_v57 }
 0x35a   :  { %2938 = vmatpush1.msra.mxu0 %v2906_v7 }
 0x35b   :  { %2939 = vmatprep.subr.mxu0 %v2904_v46 }
 0x35c   :  { %2940 = vmatpush1.msra.mxu0 %v2903_v41 }
 0x35d   :  { %2941 = vmatprep.subr.mxu0 %v2901_v29 }
 0x35e   :  { %2942 = vmatpush1.msra.mxu0 %v2900_v20 }
 0x35f   :  { %2943 = vmatprep.subr.mxu0 %v2898_v28 }
 0x360   :  { %2944 = vmatpush1.msra.mxu0 %v2897_v31 }
 0x361   :  { %3203 = vmatmul.mubr.msk.f32.vlgmr.msra.gmra.mxu0 %vm2710_vm3, %v2909_v27 }
 0x406   :  { %v3050_v60 = vpop.f32.mrf.mxu1 }
 0x407   :  { %v3071_v4 = vrot.slane %v3050_v60, %v3063_v44 }
 0x408   :  { %v3293_v2 = vpop.f32.mrf.mxu1 }
 0x421   :  { %v2979_v38 = vpop.f32.mrf.mxu0 }
 0x423   :  { %v2981_v35 = vpop.f32.mrf.mxu0 }
 0x424   :  { %v3057_v22 = vcombine.low %v2979_v38, %v2981_v35 }
 0x426   :  { %v3064_v25 = vrot.slane %v3057_v22, %v3063_v44 }
 0x428   :  { %v3072_v33 = vcombine.low %v3064_v25, %v3071_v4 }
 0x42a   :  { %v3079_v0 = vrot.slane %v3072_v33, %v3063_v44 }
 0x42c   :  { %3085 = vst.msk [vmem:[%s4797_s9] sm:$0x7] %vm3083_vm5, %v3079_v0 }

</bundles_post_ra>
